<compile_context>
chip_gen: v7x
topology: tpu7x:2x2x1
jax: 0.10.0
libtpu: 0.0.40
codegen_flags: <defaults>
</compile_context>

<pallas_src>
import jax
import jax.numpy as jnp
from jax.experimental import pallas as pl
from jax.experimental.pallas import tpu as pltpu


def dual_model_kernel(x_ref, w1_ref, b1_ref, w23_ref, b23_ref, out_ref):
    # x_ref   : (K, TILE_NB, 128)        VMEM f32   input, batch-on-lanes
    # w1_ref  : (K, H)                   SMEM f32   embedding weights (scalar reads)
    # b1_ref  : (1, H)                   SMEM f32
    # w23_ref : (H, 2*O)                 SMEM f32   predictor1 | predictor2 fused
    # b23_ref : (1, 2*O)                 SMEM f32
    # out_ref : (H + 2*O, TILE_NB, 128)  VMEM f32   rows [0,H): hidden,
    #                                               rows [H,H+2O): packed log-probs
    K, H = w1_ref.shape
    O2 = w23_ref.shape[1]
    O = O2 // 2

    # ---- embedding_net + ReLU: scalar x vector MACs on the VPU -------------
    xs = [x_ref[k] for k in range(K)]                   # dense (TILE_NB,128) slabs
    for h in range(H):
        acc = xs[0] * w1_ref[0, h] + b1_ref[0, h]
        for k in range(1, K):
            acc = acc + xs[k] * w1_ref[k, h]
        out_ref[h] = jnp.maximum(acc, 0.0)              # dense, unmasked store

    # ---- two heads + log-softmax, one head at a time (small live set) ------
    for head in range(2):
        rows = []
        for j in range(O):
            o = head * O + j
            acc = out_ref[0] * w23_ref[0, o] + b23_ref[0, o]
            for h in range(1, H):
                acc = acc + out_ref[h] * w23_ref[h, o]  # cheap VMEM re-reads
            rows.append(acc)

        # pairwise log-softmax over the O logit rows (no axis reductions)
        m = rows[0]
        for r in rows[1:]:
            m = jnp.maximum(m, r)
        s = jnp.exp(rows[0] - m)
        for r in rows[1:]:
            s = s + jnp.exp(r - m)
        lse = m + jnp.log(s)
        for j, r in enumerate(rows):
            out_ref[H + head * O + j] = r - lse


def dual_model_forward(x, params, *, tile_b=16384):
    """x: [B, input_dim] f32. params hold pre-transposed ([in, out]) weights.
    Returns (hidden [B,H], out1 [B,O], out2 [B,O]) like the PyTorch module."""
    w1, b1 = params["w1"], params["b1"]                           # (K,H), (1,H)
    w23 = jnp.concatenate([params["w2"], params["w3"]], axis=1)   # (H, 2O)
    b23 = jnp.concatenate([params["b2"], params["b3"]], axis=1)   # (1, 2O)

    B, K = x.shape
    H = w1.shape[1]
    O = params["w2"].shape[1]
    R = H + 2 * O

    # --- batch-on-lanes plumbing: pad B to a multiple of 128, fold to (NB,128)
    LANES = 128
    B_pad = ((B + LANES - 1) // LANES) * LANES
    if B_pad != B:
        x = jnp.pad(x, ((0, B_pad - B), (0, 0)))        # zero pad -> finite math
    NB = B_pad // LANES
    x_t = x.T.reshape(K, NB, LANES)

    # --- tile the batch-chunk (sublane) axis; keep grid >= 2 when legal -----
    tile_nb = max(8, (tile_b // LANES) // 8 * 8)        # multiple of 8 sublanes
    if NB > tile_nb:
        TILE_NB = tile_nb
    elif NB % 16 == 0:
        TILE_NB = NB // 2                               # grid of 2 (v7x megacore)
    else:
        TILE_NB = NB                                    # single full block
    grid = (pl.cdiv(NB, TILE_NB),)

    smem = pltpu.MemorySpace.SMEM
    grid_spec = pl.GridSpec(
        grid=grid,
        in_specs=[
            pl.BlockSpec((K, TILE_NB, LANES), lambda i: (0, i, 0)),  # x^T tiles
            pl.BlockSpec(memory_space=smem),    # w1  (tiny, scalar reads)
            pl.BlockSpec(memory_space=smem),    # b1
            pl.BlockSpec(memory_space=smem),    # w23 (both heads fused)
            pl.BlockSpec(memory_space=smem),    # b23
        ],
        out_specs=pl.BlockSpec((R, TILE_NB, LANES), lambda i: (0, i, 0)),
    )

    packed = pl.pallas_call(
        dual_model_kernel,
        grid_spec=grid_spec,
        out_shape=jax.ShapeDtypeStruct((R, NB, LANES), jnp.float32),
        compiler_params=pltpu.CompilerParams(
            dimension_semantics=("parallel",)),
    )(x_t, w1, b1, w23, b23)

    flat = packed.reshape(R, B_pad)[:, :B]              # drop padding rows
    hidden = flat[:H].T
    out1 = flat[H:H + O].T
    out2 = flat[H + O:].T
    return hidden, out1, out2


def init_params(key, input_dim=2, output_dim=2, hidden_dim=10):
    """Deterministic init mimicking nn.Linear's uniform(-1/sqrt(fan_in), ...)."""
    ks = jax.random.split(key, 6)

    def lin(kw, kb, fan_in, fan_out):
        bound = 1.0 / jnp.sqrt(fan_in)
        # stored already transposed: [fan_in, fan_out]
        w = jax.random.uniform(kw, (fan_in, fan_out), jnp.float32, -bound, bound)
        b = jax.random.uniform(kb, (1, fan_out), jnp.float32, -bound, bound)
        return w, b

    w1, b1 = lin(ks[0], ks[1], input_dim, hidden_dim)
    w2, b2 = lin(ks[2], ks[3], hidden_dim, output_dim)
    w3, b3 = lin(ks[4], ks[5], hidden_dim, output_dim)
    return {"w1": w1, "b1": b1, "w2": w2, "b2": b2, "w3": w3, "b3": b3}


def reference_forward(x, params):
    """Plain-JAX reference for sanity checking."""
    hidden = jnp.maximum(x @ params["w1"] + params["b1"], 0.0)
    out1 = jax.nn.log_softmax(hidden @ params["w2"] + params["b2"], axis=-1)
    out2 = jax.nn.log_softmax(hidden @ params["w3"] + params["b3"], axis=-1)
    return hidden, out1, out2


if __name__ == "__main__":
    key = jax.random.PRNGKey(0)
    k_params, k_x = jax.random.split(key)

    input_dim, output_dim, hidden_dim = 2, 2, 10
    batch = 2000   # not a multiple of 128 -> exercises the pad / unpad path

    params = init_params(k_params, input_dim, output_dim, hidden_dim)
    x = jax.random.normal(k_x, (batch, input_dim), jnp.float32)

    hidden, out1, out2 = dual_model_forward(x, params)
    jax.block_until_ready((hidden, out1, out2))

    # correctness check against the plain-JAX reference
    h_ref, o1_ref, o2_ref = reference_forward(x, params)
    assert jnp.allclose(hidden, h_ref, atol=1e-5, rtol=1e-5)
    assert jnp.allclose(out1, o1_ref, atol=1e-5, rtol=1e-5)
    assert jnp.allclose(out2, o2_ref, atol=1e-5, rtol=1e-5)

    print("KERNEL_OK")
</pallas_src>

<mosaic_0001>
module attributes {stable_mosaic.version = 11 : i64} {
  func.func @dual_model_kernel(%arg0: i32, %arg1: memref<2x8x128xf32, #tpu.memory_space<vmem>>, %arg2: memref<2x10xf32, #tpu.memory_space<smem>>, %arg3: memref<1x10xf32, #tpu.memory_space<smem>>, %arg4: memref<10x4xf32, #tpu.memory_space<smem>>, %arg5: memref<1x4xf32, #tpu.memory_space<smem>>, %arg6: memref<14x8x128xf32, #tpu.memory_space<vmem>>) attributes {dimension_semantics = [#tpu.dimension_semantics<parallel>], iteration_bounds = array<i64: 2>, scalar_prefetch = 0 : i64, scratch_operands = 0 : i64, tpu.core_type = #tpu.core_type<tc>, window_params = [{transform_indices = @transform_0, window_bounds = array<i64: 2, 8, 128>}, {transform_indices = @transform_1, window_bounds = array<i64: 2, 10>}, {transform_indices = @transform_2, window_bounds = array<i64: 1, 10>}, {transform_indices = @transform_3, window_bounds = array<i64: 10, 4>}, {transform_indices = @transform_4, window_bounds = array<i64: 1, 4>}, {transform_indices = @transform_5, window_bounds = array<i64: 14, 8, 128>}]} {
    %c0 = arith.constant 0 : index
    %c0_0 = arith.constant 0 : index
    %c0_1 = arith.constant 0 : index
    %0 = vector.load %arg1[%c0, %c0_0, %c0_1] : memref<2x8x128xf32, #tpu.memory_space<vmem>>, vector<1x8x128xf32>
    %1 = vector.shape_cast %0 : vector<1x8x128xf32> to vector<8x128xf32>
    %c1 = arith.constant 1 : index
    %c0_2 = arith.constant 0 : index
    %c0_3 = arith.constant 0 : index
    %2 = vector.load %arg1[%c1, %c0_2, %c0_3] : memref<2x8x128xf32, #tpu.memory_space<vmem>>, vector<1x8x128xf32>
    %3 = vector.shape_cast %2 : vector<1x8x128xf32> to vector<8x128xf32>
    %c0_4 = arith.constant 0 : index
    %c0_5 = arith.constant 0 : index
    %4 = memref.load %arg2[%c0_4, %c0_5] : memref<2x10xf32, #tpu.memory_space<smem>>
    %5 = vector.broadcast %4 : f32 to vector<8x128xf32>
    %6 = arith.mulf %1, %5 : vector<8x128xf32>
    %c0_6 = arith.constant 0 : index
    %c0_7 = arith.constant 0 : index
    %7 = memref.load %arg3[%c0_6, %c0_7] : memref<1x10xf32, #tpu.memory_space<smem>>
    %8 = vector.broadcast %7 : f32 to vector<8x128xf32>
    %9 = arith.addf %6, %8 : vector<8x128xf32>
    %c1_8 = arith.constant 1 : index
    %c0_9 = arith.constant 0 : index
    %10 = memref.load %arg2[%c1_8, %c0_9] : memref<2x10xf32, #tpu.memory_space<smem>>
    %11 = vector.broadcast %10 : f32 to vector<8x128xf32>
    %12 = arith.mulf %3, %11 : vector<8x128xf32>
    %13 = arith.addf %9, %12 : vector<8x128xf32>
    %cst = arith.constant 0.000000e+00 : f32
    %14 = vector.broadcast %cst : f32 to vector<8x128xf32>
    %15 = arith.maximumf %13, %14 : vector<8x128xf32>
    %c0_10 = arith.constant 0 : index
    %c0_11 = arith.constant 0 : index
    %c0_12 = arith.constant 0 : index
    %16 = vector.load %arg6[%c0_10, %c0_11, %c0_12] : memref<14x8x128xf32, #tpu.memory_space<vmem>>, vector<1x8x128xf32>
    %17 = vector.shape_cast %16 : vector<1x8x128xf32> to vector<8x128xf32>
    %18 = vector.shape_cast %15 : vector<8x128xf32> to vector<1x8x128xf32>
    tpu.vector_store %arg6[%c0_10, %c0_11, %c0_12], %18 {strides = array<i32>} : memref<14x8x128xf32, #tpu.memory_space<vmem>>, vector<1x8x128xf32>,
    %c0_13 = arith.constant 0 : index
    %c1_14 = arith.constant 1 : index
    %19 = memref.load %arg2[%c0_13, %c1_14] : memref<2x10xf32, #tpu.memory_space<smem>>
    %20 = vector.broadcast %19 : f32 to vector<8x128xf32>
    %21 = arith.mulf %1, %20 : vector<8x128xf32>
    %c0_15 = arith.constant 0 : index
    %c1_16 = arith.constant 1 : index
    %22 = memref.load %arg3[%c0_15, %c1_16] : memref<1x10xf32, #tpu.memory_space<smem>>
    %23 = vector.broadcast %22 : f32 to vector<8x128xf32>
    %24 = arith.addf %21, %23 : vector<8x128xf32>
    %c1_17 = arith.constant 1 : index
    %c1_18 = arith.constant 1 : index
    %25 = memref.load %arg2[%c1_17, %c1_18] : memref<2x10xf32, #tpu.memory_space<smem>>
    %26 = vector.broadcast %25 : f32 to vector<8x128xf32>
    %27 = arith.mulf %3, %26 : vector<8x128xf32>
    %28 = arith.addf %24, %27 : vector<8x128xf32>
    %cst_19 = arith.constant 0.000000e+00 : f32
    %29 = vector.broadcast %cst_19 : f32 to vector<8x128xf32>
    %30 = arith.maximumf %28, %29 : vector<8x128xf32>
    %c1_20 = arith.constant 1 : index
    %c0_21 = arith.constant 0 : index
    %c0_22 = arith.constant 0 : index
    %31 = vector.load %arg6[%c1_20, %c0_21, %c0_22] : memref<14x8x128xf32, #tpu.memory_space<vmem>>, vector<1x8x128xf32>
    %32 = vector.shape_cast %31 : vector<1x8x128xf32> to vector<8x128xf32>
    %33 = vector.shape_cast %30 : vector<8x128xf32> to vector<1x8x128xf32>
    tpu.vector_store %arg6[%c1_20, %c0_21, %c0_22], %33 {strides = array<i32>} : memref<14x8x128xf32, #tpu.memory_space<vmem>>, vector<1x8x128xf32>,
    %c0_23 = arith.constant 0 : index
    %c2 = arith.constant 2 : index
    %34 = memref.load %arg2[%c0_23, %c2] : memref<2x10xf32, #tpu.memory_space<smem>>
    %35 = vector.broadcast %34 : f32 to vector<8x128xf32>
    %36 = arith.mulf %1, %35 : vector<8x128xf32>
    %c0_24 = arith.constant 0 : index
    %c2_25 = arith.constant 2 : index
    %37 = memref.load %arg3[%c0_24, %c2_25] : memref<1x10xf32, #tpu.memory_space<smem>>
    %38 = vector.broadcast %37 : f32 to vector<8x128xf32>
    %39 = arith.addf %36, %38 : vector<8x128xf32>
    %c1_26 = arith.constant 1 : index
    %c2_27 = arith.constant 2 : index
    %40 = memref.load %arg2[%c1_26, %c2_27] : memref<2x10xf32, #tpu.memory_space<smem>>
    %41 = vector.broadcast %40 : f32 to vector<8x128xf32>
    %42 = arith.mulf %3, %41 : vector<8x128xf32>
    %43 = arith.addf %39, %42 : vector<8x128xf32>
    %cst_28 = arith.constant 0.000000e+00 : f32
    %44 = vector.broadcast %cst_28 : f32 to vector<8x128xf32>
    %45 = arith.maximumf %43, %44 : vector<8x128xf32>
    %c2_29 = arith.constant 2 : index
    %c0_30 = arith.constant 0 : index
    %c0_31 = arith.constant 0 : index
    %46 = vector.load %arg6[%c2_29, %c0_30, %c0_31] : memref<14x8x128xf32, #tpu.memory_space<vmem>>, vector<1x8x128xf32>
    %47 = vector.shape_cast %46 : vector<1x8x128xf32> to vector<8x128xf32>
    %48 = vector.shape_cast %45 : vector<8x128xf32> to vector<1x8x128xf32>
    tpu.vector_store %arg6[%c2_29, %c0_30, %c0_31], %48 {strides = array<i32>} : memref<14x8x128xf32, #tpu.memory_space<vmem>>, vector<1x8x128xf32>,
    %c0_32 = arith.constant 0 : index
    %c3 = arith.constant 3 : index
    %49 = memref.load %arg2[%c0_32, %c3] : memref<2x10xf32, #tpu.memory_space<smem>>
    %50 = vector.broadcast %49 : f32 to vector<8x128xf32>
    %51 = arith.mulf %1, %50 : vector<8x128xf32>
    %c0_33 = arith.constant 0 : index
    %c3_34 = arith.constant 3 : index
    %52 = memref.load %arg3[%c0_33, %c3_34] : memref<1x10xf32, #tpu.memory_space<smem>>
    %53 = vector.broadcast %52 : f32 to vector<8x128xf32>
    %54 = arith.addf %51, %53 : vector<8x128xf32>
    %c1_35 = arith.constant 1 : index
    %c3_36 = arith.constant 3 : index
    %55 = memref.load %arg2[%c1_35, %c3_36] : memref<2x10xf32, #tpu.memory_space<smem>>
    %56 = vector.broadcast %55 : f32 to vector<8x128xf32>
    %57 = arith.mulf %3, %56 : vector<8x128xf32>
    %58 = arith.addf %54, %57 : vector<8x128xf32>
    %cst_37 = arith.constant 0.000000e+00 : f32
    %59 = vector.broadcast %cst_37 : f32 to vector<8x128xf32>
    %60 = arith.maximumf %58, %59 : vector<8x128xf32>
    %c3_38 = arith.constant 3 : index
    %c0_39 = arith.constant 0 : index
    %c0_40 = arith.constant 0 : index
    %61 = vector.load %arg6[%c3_38, %c0_39, %c0_40] : memref<14x8x128xf32, #tpu.memory_space<vmem>>, vector<1x8x128xf32>
    %62 = vector.shape_cast %61 : vector<1x8x128xf32> to vector<8x128xf32>
    %63 = vector.shape_cast %60 : vector<8x128xf32> to vector<1x8x128xf32>
    tpu.vector_store %arg6[%c3_38, %c0_39, %c0_40], %63 {strides = array<i32>} : memref<14x8x128xf32, #tpu.memory_space<vmem>>, vector<1x8x128xf32>,
    %c0_41 = arith.constant 0 : index
    %c4 = arith.constant 4 : index
    %64 = memref.load %arg2[%c0_41, %c4] : memref<2x10xf32, #tpu.memory_space<smem>>
    %65 = vector.broadcast %64 : f32 to vector<8x128xf32>
    %66 = arith.mulf %1, %65 : vector<8x128xf32>
    %c0_42 = arith.constant 0 : index
    %c4_43 = arith.constant 4 : index
    %67 = memref.load %arg3[%c0_42, %c4_43] : memref<1x10xf32, #tpu.memory_space<smem>>
    %68 = vector.broadcast %67 : f32 to vector<8x128xf32>
    %69 = arith.addf %66, %68 : vector<8x128xf32>
    %c1_44 = arith.constant 1 : index
    %c4_45 = arith.constant 4 : index
    %70 = memref.load %arg2[%c1_44, %c4_45] : memref<2x10xf32, #tpu.memory_space<smem>>
    %71 = vector.broadcast %70 : f32 to vector<8x128xf32>
    %72 = arith.mulf %3, %71 : vector<8x128xf32>
    %73 = arith.addf %69, %72 : vector<8x128xf32>
    %cst_46 = arith.constant 0.000000e+00 : f32
    %74 = vector.broadcast %cst_46 : f32 to vector<8x128xf32>
    %75 = arith.maximumf %73, %74 : vector<8x128xf32>
    %c4_47 = arith.constant 4 : index
    %c0_48 = arith.constant 0 : index
    %c0_49 = arith.constant 0 : index
    %76 = vector.load %arg6[%c4_47, %c0_48, %c0_49] : memref<14x8x128xf32, #tpu.memory_space<vmem>>, vector<1x8x128xf32>
    %77 = vector.shape_cast %76 : vector<1x8x128xf32> to vector<8x128xf32>
    %78 = vector.shape_cast %75 : vector<8x128xf32> to vector<1x8x128xf32>
    tpu.vector_store %arg6[%c4_47, %c0_48, %c0_49], %78 {strides = array<i32>} : memref<14x8x128xf32, #tpu.memory_space<vmem>>, vector<1x8x128xf32>,
    %c0_50 = arith.constant 0 : index
    %c5 = arith.constant 5 : index
    %79 = memref.load %arg2[%c0_50, %c5] : memref<2x10xf32, #tpu.memory_space<smem>>
    %80 = vector.broadcast %79 : f32 to vector<8x128xf32>
    %81 = arith.mulf %1, %80 : vector<8x128xf32>
    %c0_51 = arith.constant 0 : index
    %c5_52 = arith.constant 5 : index
    %82 = memref.load %arg3[%c0_51, %c5_52] : memref<1x10xf32, #tpu.memory_space<smem>>
    %83 = vector.broadcast %82 : f32 to vector<8x128xf32>
    %84 = arith.addf %81, %83 : vector<8x128xf32>
    %c1_53 = arith.constant 1 : index
    %c5_54 = arith.constant 5 : index
    %85 = memref.load %arg2[%c1_53, %c5_54] : memref<2x10xf32, #tpu.memory_space<smem>>
    %86 = vector.broadcast %85 : f32 to vector<8x128xf32>
    %87 = arith.mulf %3, %86 : vector<8x128xf32>
    %88 = arith.addf %84, %87 : vector<8x128xf32>
    %cst_55 = arith.constant 0.000000e+00 : f32
    %89 = vector.broadcast %cst_55 : f32 to vector<8x128xf32>
    %90 = arith.maximumf %88, %89 : vector<8x128xf32>
    %c5_56 = arith.constant 5 : index
    %c0_57 = arith.constant 0 : index
    %c0_58 = arith.constant 0 : index
    %91 = vector.load %arg6[%c5_56, %c0_57, %c0_58] : memref<14x8x128xf32, #tpu.memory_space<vmem>>, vector<1x8x128xf32>
    %92 = vector.shape_cast %91 : vector<1x8x128xf32> to vector<8x128xf32>
    %93 = vector.shape_cast %90 : vector<8x128xf32> to vector<1x8x128xf32>
    tpu.vector_store %arg6[%c5_56, %c0_57, %c0_58], %93 {strides = array<i32>} : memref<14x8x128xf32, #tpu.memory_space<vmem>>, vector<1x8x128xf32>,
    %c0_59 = arith.constant 0 : index
    %c6 = arith.constant 6 : index
    %94 = memref.load %arg2[%c0_59, %c6] : memref<2x10xf32, #tpu.memory_space<smem>>
    %95 = vector.broadcast %94 : f32 to vector<8x128xf32>
    %96 = arith.mulf %1, %95 : vector<8x128xf32>
    %c0_60 = arith.constant 0 : index
    %c6_61 = arith.constant 6 : index
    %97 = memref.load %arg3[%c0_60, %c6_61] : memref<1x10xf32, #tpu.memory_space<smem>>
    %98 = vector.broadcast %97 : f32 to vector<8x128xf32>
    %99 = arith.addf %96, %98 : vector<8x128xf32>
    %c1_62 = arith.constant 1 : index
    %c6_63 = arith.constant 6 : index
    %100 = memref.load %arg2[%c1_62, %c6_63] : memref<2x10xf32, #tpu.memory_space<smem>>
    %101 = vector.broadcast %100 : f32 to vector<8x128xf32>
    %102 = arith.mulf %3, %101 : vector<8x128xf32>
    %103 = arith.addf %99, %102 : vector<8x128xf32>
    %cst_64 = arith.constant 0.000000e+00 : f32
    %104 = vector.broadcast %cst_64 : f32 to vector<8x128xf32>
    %105 = arith.maximumf %103, %104 : vector<8x128xf32>
    %c6_65 = arith.constant 6 : index
    %c0_66 = arith.constant 0 : index
    %c0_67 = arith.constant 0 : index
    %106 = vector.load %arg6[%c6_65, %c0_66, %c0_67] : memref<14x8x128xf32, #tpu.memory_space<vmem>>, vector<1x8x128xf32>
    %107 = vector.shape_cast %106 : vector<1x8x128xf32> to vector<8x128xf32>
    %108 = vector.shape_cast %105 : vector<8x128xf32> to vector<1x8x128xf32>
    tpu.vector_store %arg6[%c6_65, %c0_66, %c0_67], %108 {strides = array<i32>} : memref<14x8x128xf32, #tpu.memory_space<vmem>>, vector<1x8x128xf32>,
    %c0_68 = arith.constant 0 : index
    %c7 = arith.constant 7 : index
    %109 = memref.load %arg2[%c0_68, %c7] : memref<2x10xf32, #tpu.memory_space<smem>>
    %110 = vector.broadcast %109 : f32 to vector<8x128xf32>
    %111 = arith.mulf %1, %110 : vector<8x128xf32>
    %c0_69 = arith.constant 0 : index
    %c7_70 = arith.constant 7 : index
    %112 = memref.load %arg3[%c0_69, %c7_70] : memref<1x10xf32, #tpu.memory_space<smem>>
    %113 = vector.broadcast %112 : f32 to vector<8x128xf32>
    %114 = arith.addf %111, %113 : vector<8x128xf32>
    %c1_71 = arith.constant 1 : index
    %c7_72 = arith.constant 7 : index
    %115 = memref.load %arg2[%c1_71, %c7_72] : memref<2x10xf32, #tpu.memory_space<smem>>
    %116 = vector.broadcast %115 : f32 to vector<8x128xf32>
    %117 = arith.mulf %3, %116 : vector<8x128xf32>
    %118 = arith.addf %114, %117 : vector<8x128xf32>
    %cst_73 = arith.constant 0.000000e+00 : f32
    %119 = vector.broadcast %cst_73 : f32 to vector<8x128xf32>
    %120 = arith.maximumf %118, %119 : vector<8x128xf32>
    %c7_74 = arith.constant 7 : index
    %c0_75 = arith.constant 0 : index
    %c0_76 = arith.constant 0 : index
    %121 = vector.load %arg6[%c7_74, %c0_75, %c0_76] : memref<14x8x128xf32, #tpu.memory_space<vmem>>, vector<1x8x128xf32>
    %122 = vector.shape_cast %121 : vector<1x8x128xf32> to vector<8x128xf32>
    %123 = vector.shape_cast %120 : vector<8x128xf32> to vector<1x8x128xf32>
    tpu.vector_store %arg6[%c7_74, %c0_75, %c0_76], %123 {strides = array<i32>} : memref<14x8x128xf32, #tpu.memory_space<vmem>>, vector<1x8x128xf32>,
    %c0_77 = arith.constant 0 : index
    %c8 = arith.constant 8 : index
    %124 = memref.load %arg2[%c0_77, %c8] : memref<2x10xf32, #tpu.memory_space<smem>>
    %125 = vector.broadcast %124 : f32 to vector<8x128xf32>
    %126 = arith.mulf %1, %125 : vector<8x128xf32>
    %c0_78 = arith.constant 0 : index
    %c8_79 = arith.constant 8 : index
    %127 = memref.load %arg3[%c0_78, %c8_79] : memref<1x10xf32, #tpu.memory_space<smem>>
    %128 = vector.broadcast %127 : f32 to vector<8x128xf32>
    %129 = arith.addf %126, %128 : vector<8x128xf32>
    %c1_80 = arith.constant 1 : index
    %c8_81 = arith.constant 8 : index
    %130 = memref.load %arg2[%c1_80, %c8_81] : memref<2x10xf32, #tpu.memory_space<smem>>
    %131 = vector.broadcast %130 : f32 to vector<8x128xf32>
    %132 = arith.mulf %3, %131 : vector<8x128xf32>
    %133 = arith.addf %129, %132 : vector<8x128xf32>
    %cst_82 = arith.constant 0.000000e+00 : f32
    %134 = vector.broadcast %cst_82 : f32 to vector<8x128xf32>
    %135 = arith.maximumf %133, %134 : vector<8x128xf32>
    %c8_83 = arith.constant 8 : index
    %c0_84 = arith.constant 0 : index
    %c0_85 = arith.constant 0 : index
    %136 = vector.load %arg6[%c8_83, %c0_84, %c0_85] : memref<14x8x128xf32, #tpu.memory_space<vmem>>, vector<1x8x128xf32>
    %137 = vector.shape_cast %136 : vector<1x8x128xf32> to vector<8x128xf32>
    %138 = vector.shape_cast %135 : vector<8x128xf32> to vector<1x8x128xf32>
    tpu.vector_store %arg6[%c8_83, %c0_84, %c0_85], %138 {strides = array<i32>} : memref<14x8x128xf32, #tpu.memory_space<vmem>>, vector<1x8x128xf32>,
    %c0_86 = arith.constant 0 : index
    %c9 = arith.constant 9 : index
    %139 = memref.load %arg2[%c0_86, %c9] : memref<2x10xf32, #tpu.memory_space<smem>>
    %140 = vector.broadcast %139 : f32 to vector<8x128xf32>
    %141 = arith.mulf %1, %140 : vector<8x128xf32>
    %c0_87 = arith.constant 0 : index
    %c9_88 = arith.constant 9 : index
    %142 = memref.load %arg3[%c0_87, %c9_88] : memref<1x10xf32, #tpu.memory_space<smem>>
    %143 = vector.broadcast %142 : f32 to vector<8x128xf32>
    %144 = arith.addf %141, %143 : vector<8x128xf32>
    %c1_89 = arith.constant 1 : index
    %c9_90 = arith.constant 9 : index
    %145 = memref.load %arg2[%c1_89, %c9_90] : memref<2x10xf32, #tpu.memory_space<smem>>
    %146 = vector.broadcast %145 : f32 to vector<8x128xf32>
    %147 = arith.mulf %3, %146 : vector<8x128xf32>
    %148 = arith.addf %144, %147 : vector<8x128xf32>
    %cst_91 = arith.constant 0.000000e+00 : f32
    %149 = vector.broadcast %cst_91 : f32 to vector<8x128xf32>
    %150 = arith.maximumf %148, %149 : vector<8x128xf32>
    %c9_92 = arith.constant 9 : index
    %c0_93 = arith.constant 0 : index
    %c0_94 = arith.constant 0 : index
    %151 = vector.load %arg6[%c9_92, %c0_93, %c0_94] : memref<14x8x128xf32, #tpu.memory_space<vmem>>, vector<1x8x128xf32>
    %152 = vector.shape_cast %151 : vector<1x8x128xf32> to vector<8x128xf32>
    %153 = vector.shape_cast %150 : vector<8x128xf32> to vector<1x8x128xf32>
    tpu.vector_store %arg6[%c9_92, %c0_93, %c0_94], %153 {strides = array<i32>} : memref<14x8x128xf32, #tpu.memory_space<vmem>>, vector<1x8x128xf32>,
    %c0_95 = arith.constant 0 : index
    %c0_96 = arith.constant 0 : index
    %c0_97 = arith.constant 0 : index
    %154 = vector.load %arg6[%c0_95, %c0_96, %c0_97] : memref<14x8x128xf32, #tpu.memory_space<vmem>>, vector<1x8x128xf32>
    %155 = vector.shape_cast %154 : vector<1x8x128xf32> to vector<8x128xf32>
    %c0_98 = arith.constant 0 : index
    %c0_99 = arith.constant 0 : index
    %156 = memref.load %arg4[%c0_98, %c0_99] : memref<10x4xf32, #tpu.memory_space<smem>>
    %157 = vector.broadcast %156 : f32 to vector<8x128xf32>
    %158 = arith.mulf %155, %157 : vector<8x128xf32>
    %c0_100 = arith.constant 0 : index
    %c0_101 = arith.constant 0 : index
    %159 = memref.load %arg5[%c0_100, %c0_101] : memref<1x4xf32, #tpu.memory_space<smem>>
    %160 = vector.broadcast %159 : f32 to vector<8x128xf32>
    %161 = arith.addf %158, %160 : vector<8x128xf32>
    %c1_102 = arith.constant 1 : index
    %c0_103 = arith.constant 0 : index
    %c0_104 = arith.constant 0 : index
    %162 = vector.load %arg6[%c1_102, %c0_103, %c0_104] : memref<14x8x128xf32, #tpu.memory_space<vmem>>, vector<1x8x128xf32>
    %163 = vector.shape_cast %162 : vector<1x8x128xf32> to vector<8x128xf32>
    %c1_105 = arith.constant 1 : index
    %c0_106 = arith.constant 0 : index
    %164 = memref.load %arg4[%c1_105, %c0_106] : memref<10x4xf32, #tpu.memory_space<smem>>
    %165 = vector.broadcast %164 : f32 to vector<8x128xf32>
    %166 = arith.mulf %163, %165 : vector<8x128xf32>
    %167 = arith.addf %161, %166 : vector<8x128xf32>
    %c2_107 = arith.constant 2 : index
    %c0_108 = arith.constant 0 : index
    %c0_109 = arith.constant 0 : index
    %168 = vector.load %arg6[%c2_107, %c0_108, %c0_109] : memref<14x8x128xf32, #tpu.memory_space<vmem>>, vector<1x8x128xf32>
    %169 = vector.shape_cast %168 : vector<1x8x128xf32> to vector<8x128xf32>
    %c2_110 = arith.constant 2 : index
    %c0_111 = arith.constant 0 : index
    %170 = memref.load %arg4[%c2_110, %c0_111] : memref<10x4xf32, #tpu.memory_space<smem>>
    %171 = vector.broadcast %170 : f32 to vector<8x128xf32>
    %172 = arith.mulf %169, %171 : vector<8x128xf32>
    %173 = arith.addf %167, %172 : vector<8x128xf32>
    %c3_112 = arith.constant 3 : index
    %c0_113 = arith.constant 0 : index
    %c0_114 = arith.constant 0 : index
    %174 = vector.load %arg6[%c3_112, %c0_113, %c0_114] : memref<14x8x128xf32, #tpu.memory_space<vmem>>, vector<1x8x128xf32>
    %175 = vector.shape_cast %174 : vector<1x8x128xf32> to vector<8x128xf32>
    %c3_115 = arith.constant 3 : index
    %c0_116 = arith.constant 0 : index
    %176 = memref.load %arg4[%c3_115, %c0_116] : memref<10x4xf32, #tpu.memory_space<smem>>
    %177 = vector.broadcast %176 : f32 to vector<8x128xf32>
    %178 = arith.mulf %175, %177 : vector<8x128xf32>
    %179 = arith.addf %173, %178 : vector<8x128xf32>
    %c4_117 = arith.constant 4 : index
    %c0_118 = arith.constant 0 : index
    %c0_119 = arith.constant 0 : index
    %180 = vector.load %arg6[%c4_117, %c0_118, %c0_119] : memref<14x8x128xf32, #tpu.memory_space<vmem>>, vector<1x8x128xf32>
    %181 = vector.shape_cast %180 : vector<1x8x128xf32> to vector<8x128xf32>
    %c4_120 = arith.constant 4 : index
    %c0_121 = arith.constant 0 : index
    %182 = memref.load %arg4[%c4_120, %c0_121] : memref<10x4xf32, #tpu.memory_space<smem>>
    %183 = vector.broadcast %182 : f32 to vector<8x128xf32>
    %184 = arith.mulf %181, %183 : vector<8x128xf32>
    %185 = arith.addf %179, %184 : vector<8x128xf32>
    %c5_122 = arith.constant 5 : index
    %c0_123 = arith.constant 0 : index
    %c0_124 = arith.constant 0 : index
    %186 = vector.load %arg6[%c5_122, %c0_123, %c0_124] : memref<14x8x128xf32, #tpu.memory_space<vmem>>, vector<1x8x128xf32>
    %187 = vector.shape_cast %186 : vector<1x8x128xf32> to vector<8x128xf32>
    %c5_125 = arith.constant 5 : index
    %c0_126 = arith.constant 0 : index
    %188 = memref.load %arg4[%c5_125, %c0_126] : memref<10x4xf32, #tpu.memory_space<smem>>
    %189 = vector.broadcast %188 : f32 to vector<8x128xf32>
    %190 = arith.mulf %187, %189 : vector<8x128xf32>
    %191 = arith.addf %185, %190 : vector<8x128xf32>
    %c6_127 = arith.constant 6 : index
    %c0_128 = arith.constant 0 : index
    %c0_129 = arith.constant 0 : index
    %192 = vector.load %arg6[%c6_127, %c0_128, %c0_129] : memref<14x8x128xf32, #tpu.memory_space<vmem>>, vector<1x8x128xf32>
    %193 = vector.shape_cast %192 : vector<1x8x128xf32> to vector<8x128xf32>
    %c6_130 = arith.constant 6 : index
    %c0_131 = arith.constant 0 : index
    %194 = memref.load %arg4[%c6_130, %c0_131] : memref<10x4xf32, #tpu.memory_space<smem>>
    %195 = vector.broadcast %194 : f32 to vector<8x128xf32>
    %196 = arith.mulf %193, %195 : vector<8x128xf32>
    %197 = arith.addf %191, %196 : vector<8x128xf32>
    %c7_132 = arith.constant 7 : index
    %c0_133 = arith.constant 0 : index
    %c0_134 = arith.constant 0 : index
    %198 = vector.load %arg6[%c7_132, %c0_133, %c0_134] : memref<14x8x128xf32, #tpu.memory_space<vmem>>, vector<1x8x128xf32>
    %199 = vector.shape_cast %198 : vector<1x8x128xf32> to vector<8x128xf32>
    %c7_135 = arith.constant 7 : index
    %c0_136 = arith.constant 0 : index
    %200 = memref.load %arg4[%c7_135, %c0_136] : memref<10x4xf32, #tpu.memory_space<smem>>
    %201 = vector.broadcast %200 : f32 to vector<8x128xf32>
    %202 = arith.mulf %199, %201 : vector<8x128xf32>
    %203 = arith.addf %197, %202 : vector<8x128xf32>
    %c8_137 = arith.constant 8 : index
    %c0_138 = arith.constant 0 : index
    %c0_139 = arith.constant 0 : index
    %204 = vector.load %arg6[%c8_137, %c0_138, %c0_139] : memref<14x8x128xf32, #tpu.memory_space<vmem>>, vector<1x8x128xf32>
    %205 = vector.shape_cast %204 : vector<1x8x128xf32> to vector<8x128xf32>
    %c8_140 = arith.constant 8 : index
    %c0_141 = arith.constant 0 : index
    %206 = memref.load %arg4[%c8_140, %c0_141] : memref<10x4xf32, #tpu.memory_space<smem>>
    %207 = vector.broadcast %206 : f32 to vector<8x128xf32>
    %208 = arith.mulf %205, %207 : vector<8x128xf32>
    %209 = arith.addf %203, %208 : vector<8x128xf32>
    %c9_142 = arith.constant 9 : index
    %c0_143 = arith.constant 0 : index
    %c0_144 = arith.constant 0 : index
    %210 = vector.load %arg6[%c9_142, %c0_143, %c0_144] : memref<14x8x128xf32, #tpu.memory_space<vmem>>, vector<1x8x128xf32>
    %211 = vector.shape_cast %210 : vector<1x8x128xf32> to vector<8x128xf32>
    %c9_145 = arith.constant 9 : index
    %c0_146 = arith.constant 0 : index
    %212 = memref.load %arg4[%c9_145, %c0_146] : memref<10x4xf32, #tpu.memory_space<smem>>
    %213 = vector.broadcast %212 : f32 to vector<8x128xf32>
    %214 = arith.mulf %211, %213 : vector<8x128xf32>
    %215 = arith.addf %209, %214 : vector<8x128xf32>
    %c0_147 = arith.constant 0 : index
    %c0_148 = arith.constant 0 : index
    %c0_149 = arith.constant 0 : index
    %216 = vector.load %arg6[%c0_147, %c0_148, %c0_149] : memref<14x8x128xf32, #tpu.memory_space<vmem>>, vector<1x8x128xf32>
    %217 = vector.shape_cast %216 : vector<1x8x128xf32> to vector<8x128xf32>
    %c0_150 = arith.constant 0 : index
    %c1_151 = arith.constant 1 : index
    %218 = memref.load %arg4[%c0_150, %c1_151] : memref<10x4xf32, #tpu.memory_space<smem>>
    %219 = vector.broadcast %218 : f32 to vector<8x128xf32>
    %220 = arith.mulf %217, %219 : vector<8x128xf32>
    %c0_152 = arith.constant 0 : index
    %c1_153 = arith.constant 1 : index
    %221 = memref.load %arg5[%c0_152, %c1_153] : memref<1x4xf32, #tpu.memory_space<smem>>
    %222 = vector.broadcast %221 : f32 to vector<8x128xf32>
    %223 = arith.addf %220, %222 : vector<8x128xf32>
    %c1_154 = arith.constant 1 : index
    %c0_155 = arith.constant 0 : index
    %c0_156 = arith.constant 0 : index
    %224 = vector.load %arg6[%c1_154, %c0_155, %c0_156] : memref<14x8x128xf32, #tpu.memory_space<vmem>>, vector<1x8x128xf32>
    %225 = vector.shape_cast %224 : vector<1x8x128xf32> to vector<8x128xf32>
    %c1_157 = arith.constant 1 : index
    %c1_158 = arith.constant 1 : index
    %226 = memref.load %arg4[%c1_157, %c1_158] : memref<10x4xf32, #tpu.memory_space<smem>>
    %227 = vector.broadcast %226 : f32 to vector<8x128xf32>
    %228 = arith.mulf %225, %227 : vector<8x128xf32>
    %229 = arith.addf %223, %228 : vector<8x128xf32>
    %c2_159 = arith.constant 2 : index
    %c0_160 = arith.constant 0 : index
    %c0_161 = arith.constant 0 : index
    %230 = vector.load %arg6[%c2_159, %c0_160, %c0_161] : memref<14x8x128xf32, #tpu.memory_space<vmem>>, vector<1x8x128xf32>
    %231 = vector.shape_cast %230 : vector<1x8x128xf32> to vector<8x128xf32>
    %c2_162 = arith.constant 2 : index
    %c1_163 = arith.constant 1 : index
    %232 = memref.load %arg4[%c2_162, %c1_163] : memref<10x4xf32, #tpu.memory_space<smem>>
    %233 = vector.broadcast %232 : f32 to vector<8x128xf32>
    %234 = arith.mulf %231, %233 : vector<8x128xf32>
    %235 = arith.addf %229, %234 : vector<8x128xf32>
    %c3_164 = arith.constant 3 : index
    %c0_165 = arith.constant 0 : index
    %c0_166 = arith.constant 0 : index
    %236 = vector.load %arg6[%c3_164, %c0_165, %c0_166] : memref<14x8x128xf32, #tpu.memory_space<vmem>>, vector<1x8x128xf32>
    %237 = vector.shape_cast %236 : vector<1x8x128xf32> to vector<8x128xf32>
    %c3_167 = arith.constant 3 : index
    %c1_168 = arith.constant 1 : index
    %238 = memref.load %arg4[%c3_167, %c1_168] : memref<10x4xf32, #tpu.memory_space<smem>>
    %239 = vector.broadcast %238 : f32 to vector<8x128xf32>
    %240 = arith.mulf %237, %239 : vector<8x128xf32>
    %241 = arith.addf %235, %240 : vector<8x128xf32>
    %c4_169 = arith.constant 4 : index
    %c0_170 = arith.constant 0 : index
    %c0_171 = arith.constant 0 : index
    %242 = vector.load %arg6[%c4_169, %c0_170, %c0_171] : memref<14x8x128xf32, #tpu.memory_space<vmem>>, vector<1x8x128xf32>
    %243 = vector.shape_cast %242 : vector<1x8x128xf32> to vector<8x128xf32>
    %c4_172 = arith.constant 4 : index
    %c1_173 = arith.constant 1 : index
    %244 = memref.load %arg4[%c4_172, %c1_173] : memref<10x4xf32, #tpu.memory_space<smem>>
    %245 = vector.broadcast %244 : f32 to vector<8x128xf32>
    %246 = arith.mulf %243, %245 : vector<8x128xf32>
    %247 = arith.addf %241, %246 : vector<8x128xf32>
    %c5_174 = arith.constant 5 : index
    %c0_175 = arith.constant 0 : index
    %c0_176 = arith.constant 0 : index
    %248 = vector.load %arg6[%c5_174, %c0_175, %c0_176] : memref<14x8x128xf32, #tpu.memory_space<vmem>>, vector<1x8x128xf32>
    %249 = vector.shape_cast %248 : vector<1x8x128xf32> to vector<8x128xf32>
    %c5_177 = arith.constant 5 : index
    %c1_178 = arith.constant 1 : index
    %250 = memref.load %arg4[%c5_177, %c1_178] : memref<10x4xf32, #tpu.memory_space<smem>>
    %251 = vector.broadcast %250 : f32 to vector<8x128xf32>
    %252 = arith.mulf %249, %251 : vector<8x128xf32>
    %253 = arith.addf %247, %252 : vector<8x128xf32>
    %c6_179 = arith.constant 6 : index
    %c0_180 = arith.constant 0 : index
    %c0_181 = arith.constant 0 : index
    %254 = vector.load %arg6[%c6_179, %c0_180, %c0_181] : memref<14x8x128xf32, #tpu.memory_space<vmem>>, vector<1x8x128xf32>
    %255 = vector.shape_cast %254 : vector<1x8x128xf32> to vector<8x128xf32>
    %c6_182 = arith.constant 6 : index
    %c1_183 = arith.constant 1 : index
    %256 = memref.load %arg4[%c6_182, %c1_183] : memref<10x4xf32, #tpu.memory_space<smem>>
    %257 = vector.broadcast %256 : f32 to vector<8x128xf32>
    %258 = arith.mulf %255, %257 : vector<8x128xf32>
    %259 = arith.addf %253, %258 : vector<8x128xf32>
    %c7_184 = arith.constant 7 : index
    %c0_185 = arith.constant 0 : index
    %c0_186 = arith.constant 0 : index
    %260 = vector.load %arg6[%c7_184, %c0_185, %c0_186] : memref<14x8x128xf32, #tpu.memory_space<vmem>>, vector<1x8x128xf32>
    %261 = vector.shape_cast %260 : vector<1x8x128xf32> to vector<8x128xf32>
    %c7_187 = arith.constant 7 : index
    %c1_188 = arith.constant 1 : index
    %262 = memref.load %arg4[%c7_187, %c1_188] : memref<10x4xf32, #tpu.memory_space<smem>>
    %263 = vector.broadcast %262 : f32 to vector<8x128xf32>
    %264 = arith.mulf %261, %263 : vector<8x128xf32>
    %265 = arith.addf %259, %264 : vector<8x128xf32>
    %c8_189 = arith.constant 8 : index
    %c0_190 = arith.constant 0 : index
    %c0_191 = arith.constant 0 : index
    %266 = vector.load %arg6[%c8_189, %c0_190, %c0_191] : memref<14x8x128xf32, #tpu.memory_space<vmem>>, vector<1x8x128xf32>
    %267 = vector.shape_cast %266 : vector<1x8x128xf32> to vector<8x128xf32>
    %c8_192 = arith.constant 8 : index
    %c1_193 = arith.constant 1 : index
    %268 = memref.load %arg4[%c8_192, %c1_193] : memref<10x4xf32, #tpu.memory_space<smem>>
    %269 = vector.broadcast %268 : f32 to vector<8x128xf32>
    %270 = arith.mulf %267, %269 : vector<8x128xf32>
    %271 = arith.addf %265, %270 : vector<8x128xf32>
    %c9_194 = arith.constant 9 : index
    %c0_195 = arith.constant 0 : index
    %c0_196 = arith.constant 0 : index
    %272 = vector.load %arg6[%c9_194, %c0_195, %c0_196] : memref<14x8x128xf32, #tpu.memory_space<vmem>>, vector<1x8x128xf32>
    %273 = vector.shape_cast %272 : vector<1x8x128xf32> to vector<8x128xf32>
    %c9_197 = arith.constant 9 : index
    %c1_198 = arith.constant 1 : index
    %274 = memref.load %arg4[%c9_197, %c1_198] : memref<10x4xf32, #tpu.memory_space<smem>>
    %275 = vector.broadcast %274 : f32 to vector<8x128xf32>
    %276 = arith.mulf %273, %275 : vector<8x128xf32>
    %277 = arith.addf %271, %276 : vector<8x128xf32>
    %278 = arith.maximumf %215, %277 : vector<8x128xf32>
    %279 = arith.subf %215, %278 : vector<8x128xf32>
    %280 = math.exp %279 : vector<8x128xf32>
    %281 = arith.subf %277, %278 : vector<8x128xf32>
    %282 = math.exp %281 : vector<8x128xf32>
    %283 = arith.addf %280, %282 : vector<8x128xf32>
    %284 = math.log %283 : vector<8x128xf32>
    %285 = arith.addf %278, %284 : vector<8x128xf32>
    %286 = arith.subf %215, %285 : vector<8x128xf32>
    %c10 = arith.constant 10 : index
    %c0_199 = arith.constant 0 : index
    %c0_200 = arith.constant 0 : index
    %287 = vector.load %arg6[%c10, %c0_199, %c0_200] : memref<14x8x128xf32, #tpu.memory_space<vmem>>, vector<1x8x128xf32>
    %288 = vector.shape_cast %287 : vector<1x8x128xf32> to vector<8x128xf32>
    %289 = vector.shape_cast %286 : vector<8x128xf32> to vector<1x8x128xf32>
    tpu.vector_store %arg6[%c10, %c0_199, %c0_200], %289 {strides = array<i32>} : memref<14x8x128xf32, #tpu.memory_space<vmem>>, vector<1x8x128xf32>,
    %290 = arith.subf %277, %285 : vector<8x128xf32>
    %c11 = arith.constant 11 : index
    %c0_201 = arith.constant 0 : index
    %c0_202 = arith.constant 0 : index
    %291 = vector.load %arg6[%c11, %c0_201, %c0_202] : memref<14x8x128xf32, #tpu.memory_space<vmem>>, vector<1x8x128xf32>
    %292 = vector.shape_cast %291 : vector<1x8x128xf32> to vector<8x128xf32>
    %293 = vector.shape_cast %290 : vector<8x128xf32> to vector<1x8x128xf32>
    tpu.vector_store %arg6[%c11, %c0_201, %c0_202], %293 {strides = array<i32>} : memref<14x8x128xf32, #tpu.memory_space<vmem>>, vector<1x8x128xf32>,
    %c0_203 = arith.constant 0 : index
    %c0_204 = arith.constant 0 : index
    %c0_205 = arith.constant 0 : index
    %294 = vector.load %arg6[%c0_203, %c0_204, %c0_205] : memref<14x8x128xf32, #tpu.memory_space<vmem>>, vector<1x8x128xf32>
    %295 = vector.shape_cast %294 : vector<1x8x128xf32> to vector<8x128xf32>
    %c0_206 = arith.constant 0 : index
    %c2_207 = arith.constant 2 : index
    %296 = memref.load %arg4[%c0_206, %c2_207] : memref<10x4xf32, #tpu.memory_space<smem>>
    %297 = vector.broadcast %296 : f32 to vector<8x128xf32>
    %298 = arith.mulf %295, %297 : vector<8x128xf32>
    %c0_208 = arith.constant 0 : index
    %c2_209 = arith.constant 2 : index
    %299 = memref.load %arg5[%c0_208, %c2_209] : memref<1x4xf32, #tpu.memory_space<smem>>
    %300 = vector.broadcast %299 : f32 to vector<8x128xf32>
    %301 = arith.addf %298, %300 : vector<8x128xf32>
    %c1_210 = arith.constant 1 : index
    %c0_211 = arith.constant 0 : index
    %c0_212 = arith.constant 0 : index
    %302 = vector.load %arg6[%c1_210, %c0_211, %c0_212] : memref<14x8x128xf32, #tpu.memory_space<vmem>>, vector<1x8x128xf32>
    %303 = vector.shape_cast %302 : vector<1x8x128xf32> to vector<8x128xf32>
    %c1_213 = arith.constant 1 : index
    %c2_214 = arith.constant 2 : index
    %304 = memref.load %arg4[%c1_213, %c2_214] : memref<10x4xf32, #tpu.memory_space<smem>>
    %305 = vector.broadcast %304 : f32 to vector<8x128xf32>
    %306 = arith.mulf %303, %305 : vector<8x128xf32>
    %307 = arith.addf %301, %306 : vector<8x128xf32>
    %c2_215 = arith.constant 2 : index
    %c0_216 = arith.constant 0 : index
    %c0_217 = arith.constant 0 : index
    %308 = vector.load %arg6[%c2_215, %c0_216, %c0_217] : memref<14x8x128xf32, #tpu.memory_space<vmem>>, vector<1x8x128xf32>
    %309 = vector.shape_cast %308 : vector<1x8x128xf32> to vector<8x128xf32>
    %c2_218 = arith.constant 2 : index
    %c2_219 = arith.constant 2 : index
    %310 = memref.load %arg4[%c2_218, %c2_219] : memref<10x4xf32, #tpu.memory_space<smem>>
    %311 = vector.broadcast %310 : f32 to vector<8x128xf32>
    %312 = arith.mulf %309, %311 : vector<8x128xf32>
    %313 = arith.addf %307, %312 : vector<8x128xf32>
    %c3_220 = arith.constant 3 : index
    %c0_221 = arith.constant 0 : index
    %c0_222 = arith.constant 0 : index
    %314 = vector.load %arg6[%c3_220, %c0_221, %c0_222] : memref<14x8x128xf32, #tpu.memory_space<vmem>>, vector<1x8x128xf32>
    %315 = vector.shape_cast %314 : vector<1x8x128xf32> to vector<8x128xf32>
    %c3_223 = arith.constant 3 : index
    %c2_224 = arith.constant 2 : index
    %316 = memref.load %arg4[%c3_223, %c2_224] : memref<10x4xf32, #tpu.memory_space<smem>>
    %317 = vector.broadcast %316 : f32 to vector<8x128xf32>
    %318 = arith.mulf %315, %317 : vector<8x128xf32>
    %319 = arith.addf %313, %318 : vector<8x128xf32>
    %c4_225 = arith.constant 4 : index
    %c0_226 = arith.constant 0 : index
    %c0_227 = arith.constant 0 : index
    %320 = vector.load %arg6[%c4_225, %c0_226, %c0_227] : memref<14x8x128xf32, #tpu.memory_space<vmem>>, vector<1x8x128xf32>
    %321 = vector.shape_cast %320 : vector<1x8x128xf32> to vector<8x128xf32>
    %c4_228 = arith.constant 4 : index
    %c2_229 = arith.constant 2 : index
    %322 = memref.load %arg4[%c4_228, %c2_229] : memref<10x4xf32, #tpu.memory_space<smem>>
    %323 = vector.broadcast %322 : f32 to vector<8x128xf32>
    %324 = arith.mulf %321, %323 : vector<8x128xf32>
    %325 = arith.addf %319, %324 : vector<8x128xf32>
    %c5_230 = arith.constant 5 : index
    %c0_231 = arith.constant 0 : index
    %c0_232 = arith.constant 0 : index
    %326 = vector.load %arg6[%c5_230, %c0_231, %c0_232] : memref<14x8x128xf32, #tpu.memory_space<vmem>>, vector<1x8x128xf32>
    %327 = vector.shape_cast %326 : vector<1x8x128xf32> to vector<8x128xf32>
    %c5_233 = arith.constant 5 : index
    %c2_234 = arith.constant 2 : index
    %328 = memref.load %arg4[%c5_233, %c2_234] : memref<10x4xf32, #tpu.memory_space<smem>>
    %329 = vector.broadcast %328 : f32 to vector<8x128xf32>
    %330 = arith.mulf %327, %329 : vector<8x128xf32>
    %331 = arith.addf %325, %330 : vector<8x128xf32>
    %c6_235 = arith.constant 6 : index
    %c0_236 = arith.constant 0 : index
    %c0_237 = arith.constant 0 : index
    %332 = vector.load %arg6[%c6_235, %c0_236, %c0_237] : memref<14x8x128xf32, #tpu.memory_space<vmem>>, vector<1x8x128xf32>
    %333 = vector.shape_cast %332 : vector<1x8x128xf32> to vector<8x128xf32>
    %c6_238 = arith.constant 6 : index
    %c2_239 = arith.constant 2 : index
    %334 = memref.load %arg4[%c6_238, %c2_239] : memref<10x4xf32, #tpu.memory_space<smem>>
    %335 = vector.broadcast %334 : f32 to vector<8x128xf32>
    %336 = arith.mulf %333, %335 : vector<8x128xf32>
    %337 = arith.addf %331, %336 : vector<8x128xf32>
    %c7_240 = arith.constant 7 : index
    %c0_241 = arith.constant 0 : index
    %c0_242 = arith.constant 0 : index
    %338 = vector.load %arg6[%c7_240, %c0_241, %c0_242] : memref<14x8x128xf32, #tpu.memory_space<vmem>>, vector<1x8x128xf32>
    %339 = vector.shape_cast %338 : vector<1x8x128xf32> to vector<8x128xf32>
    %c7_243 = arith.constant 7 : index
    %c2_244 = arith.constant 2 : index
    %340 = memref.load %arg4[%c7_243, %c2_244] : memref<10x4xf32, #tpu.memory_space<smem>>
    %341 = vector.broadcast %340 : f32 to vector<8x128xf32>
    %342 = arith.mulf %339, %341 : vector<8x128xf32>
    %343 = arith.addf %337, %342 : vector<8x128xf32>
    %c8_245 = arith.constant 8 : index
    %c0_246 = arith.constant 0 : index
    %c0_247 = arith.constant 0 : index
    %344 = vector.load %arg6[%c8_245, %c0_246, %c0_247] : memref<14x8x128xf32, #tpu.memory_space<vmem>>, vector<1x8x128xf32>
    %345 = vector.shape_cast %344 : vector<1x8x128xf32> to vector<8x128xf32>
    %c8_248 = arith.constant 8 : index
    %c2_249 = arith.constant 2 : index
    %346 = memref.load %arg4[%c8_248, %c2_249] : memref<10x4xf32, #tpu.memory_space<smem>>
    %347 = vector.broadcast %346 : f32 to vector<8x128xf32>
    %348 = arith.mulf %345, %347 : vector<8x128xf32>
    %349 = arith.addf %343, %348 : vector<8x128xf32>
    %c9_250 = arith.constant 9 : index
    %c0_251 = arith.constant 0 : index
    %c0_252 = arith.constant 0 : index
    %350 = vector.load %arg6[%c9_250, %c0_251, %c0_252] : memref<14x8x128xf32, #tpu.memory_space<vmem>>, vector<1x8x128xf32>
    %351 = vector.shape_cast %350 : vector<1x8x128xf32> to vector<8x128xf32>
    %c9_253 = arith.constant 9 : index
    %c2_254 = arith.constant 2 : index
    %352 = memref.load %arg4[%c9_253, %c2_254] : memref<10x4xf32, #tpu.memory_space<smem>>
    %353 = vector.broadcast %352 : f32 to vector<8x128xf32>
    %354 = arith.mulf %351, %353 : vector<8x128xf32>
    %355 = arith.addf %349, %354 : vector<8x128xf32>
    %c0_255 = arith.constant 0 : index
    %c0_256 = arith.constant 0 : index
    %c0_257 = arith.constant 0 : index
    %356 = vector.load %arg6[%c0_255, %c0_256, %c0_257] : memref<14x8x128xf32, #tpu.memory_space<vmem>>, vector<1x8x128xf32>
    %357 = vector.shape_cast %356 : vector<1x8x128xf32> to vector<8x128xf32>
    %c0_258 = arith.constant 0 : index
    %c3_259 = arith.constant 3 : index
    %358 = memref.load %arg4[%c0_258, %c3_259] : memref<10x4xf32, #tpu.memory_space<smem>>
    %359 = vector.broadcast %358 : f32 to vector<8x128xf32>
    %360 = arith.mulf %357, %359 : vector<8x128xf32>
    %c0_260 = arith.constant 0 : index
    %c3_261 = arith.constant 3 : index
    %361 = memref.load %arg5[%c0_260, %c3_261] : memref<1x4xf32, #tpu.memory_space<smem>>
    %362 = vector.broadcast %361 : f32 to vector<8x128xf32>
    %363 = arith.addf %360, %362 : vector<8x128xf32>
    %c1_262 = arith.constant 1 : index
    %c0_263 = arith.constant 0 : index
    %c0_264 = arith.constant 0 : index
    %364 = vector.load %arg6[%c1_262, %c0_263, %c0_264] : memref<14x8x128xf32, #tpu.memory_space<vmem>>, vector<1x8x128xf32>
    %365 = vector.shape_cast %364 : vector<1x8x128xf32> to vector<8x128xf32>
    %c1_265 = arith.constant 1 : index
    %c3_266 = arith.constant 3 : index
    %366 = memref.load %arg4[%c1_265, %c3_266] : memref<10x4xf32, #tpu.memory_space<smem>>
    %367 = vector.broadcast %366 : f32 to vector<8x128xf32>
    %368 = arith.mulf %365, %367 : vector<8x128xf32>
    %369 = arith.addf %363, %368 : vector<8x128xf32>
    %c2_267 = arith.constant 2 : index
    %c0_268 = arith.constant 0 : index
    %c0_269 = arith.constant 0 : index
    %370 = vector.load %arg6[%c2_267, %c0_268, %c0_269] : memref<14x8x128xf32, #tpu.memory_space<vmem>>, vector<1x8x128xf32>
    %371 = vector.shape_cast %370 : vector<1x8x128xf32> to vector<8x128xf32>
    %c2_270 = arith.constant 2 : index
    %c3_271 = arith.constant 3 : index
    %372 = memref.load %arg4[%c2_270, %c3_271] : memref<10x4xf32, #tpu.memory_space<smem>>
    %373 = vector.broadcast %372 : f32 to vector<8x128xf32>
    %374 = arith.mulf %371, %373 : vector<8x128xf32>
    %375 = arith.addf %369, %374 : vector<8x128xf32>
    %c3_272 = arith.constant 3 : index
    %c0_273 = arith.constant 0 : index
    %c0_274 = arith.constant 0 : index
    %376 = vector.load %arg6[%c3_272, %c0_273, %c0_274] : memref<14x8x128xf32, #tpu.memory_space<vmem>>, vector<1x8x128xf32>
    %377 = vector.shape_cast %376 : vector<1x8x128xf32> to vector<8x128xf32>
    %c3_275 = arith.constant 3 : index
    %c3_276 = arith.constant 3 : index
    %378 = memref.load %arg4[%c3_275, %c3_276] : memref<10x4xf32, #tpu.memory_space<smem>>
    %379 = vector.broadcast %378 : f32 to vector<8x128xf32>
    %380 = arith.mulf %377, %379 : vector<8x128xf32>
    %381 = arith.addf %375, %380 : vector<8x128xf32>
    %c4_277 = arith.constant 4 : index
    %c0_278 = arith.constant 0 : index
    %c0_279 = arith.constant 0 : index
    %382 = vector.load %arg6[%c4_277, %c0_278, %c0_279] : memref<14x8x128xf32, #tpu.memory_space<vmem>>, vector<1x8x128xf32>
    %383 = vector.shape_cast %382 : vector<1x8x128xf32> to vector<8x128xf32>
    %c4_280 = arith.constant 4 : index
    %c3_281 = arith.constant 3 : index
    %384 = memref.load %arg4[%c4_280, %c3_281] : memref<10x4xf32, #tpu.memory_space<smem>>
    %385 = vector.broadcast %384 : f32 to vector<8x128xf32>
    %386 = arith.mulf %383, %385 : vector<8x128xf32>
    %387 = arith.addf %381, %386 : vector<8x128xf32>
    %c5_282 = arith.constant 5 : index
    %c0_283 = arith.constant 0 : index
    %c0_284 = arith.constant 0 : index
    %388 = vector.load %arg6[%c5_282, %c0_283, %c0_284] : memref<14x8x128xf32, #tpu.memory_space<vmem>>, vector<1x8x128xf32>
    %389 = vector.shape_cast %388 : vector<1x8x128xf32> to vector<8x128xf32>
    %c5_285 = arith.constant 5 : index
    %c3_286 = arith.constant 3 : index
    %390 = memref.load %arg4[%c5_285, %c3_286] : memref<10x4xf32, #tpu.memory_space<smem>>
    %391 = vector.broadcast %390 : f32 to vector<8x128xf32>
    %392 = arith.mulf %389, %391 : vector<8x128xf32>
    %393 = arith.addf %387, %392 : vector<8x128xf32>
    %c6_287 = arith.constant 6 : index
    %c0_288 = arith.constant 0 : index
    %c0_289 = arith.constant 0 : index
    %394 = vector.load %arg6[%c6_287, %c0_288, %c0_289] : memref<14x8x128xf32, #tpu.memory_space<vmem>>, vector<1x8x128xf32>
    %395 = vector.shape_cast %394 : vector<1x8x128xf32> to vector<8x128xf32>
    %c6_290 = arith.constant 6 : index
    %c3_291 = arith.constant 3 : index
    %396 = memref.load %arg4[%c6_290, %c3_291] : memref<10x4xf32, #tpu.memory_space<smem>>
    %397 = vector.broadcast %396 : f32 to vector<8x128xf32>
    %398 = arith.mulf %395, %397 : vector<8x128xf32>
    %399 = arith.addf %393, %398 : vector<8x128xf32>
    %c7_292 = arith.constant 7 : index
    %c0_293 = arith.constant 0 : index
    %c0_294 = arith.constant 0 : index
    %400 = vector.load %arg6[%c7_292, %c0_293, %c0_294] : memref<14x8x128xf32, #tpu.memory_space<vmem>>, vector<1x8x128xf32>
    %401 = vector.shape_cast %400 : vector<1x8x128xf32> to vector<8x128xf32>
    %c7_295 = arith.constant 7 : index
    %c3_296 = arith.constant 3 : index
    %402 = memref.load %arg4[%c7_295, %c3_296] : memref<10x4xf32, #tpu.memory_space<smem>>
    %403 = vector.broadcast %402 : f32 to vector<8x128xf32>
    %404 = arith.mulf %401, %403 : vector<8x128xf32>
    %405 = arith.addf %399, %404 : vector<8x128xf32>
    %c8_297 = arith.constant 8 : index
    %c0_298 = arith.constant 0 : index
    %c0_299 = arith.constant 0 : index
    %406 = vector.load %arg6[%c8_297, %c0_298, %c0_299] : memref<14x8x128xf32, #tpu.memory_space<vmem>>, vector<1x8x128xf32>
    %407 = vector.shape_cast %406 : vector<1x8x128xf32> to vector<8x128xf32>
    %c8_300 = arith.constant 8 : index
    %c3_301 = arith.constant 3 : index
    %408 = memref.load %arg4[%c8_300, %c3_301] : memref<10x4xf32, #tpu.memory_space<smem>>
    %409 = vector.broadcast %408 : f32 to vector<8x128xf32>
    %410 = arith.mulf %407, %409 : vector<8x128xf32>
    %411 = arith.addf %405, %410 : vector<8x128xf32>
    %c9_302 = arith.constant 9 : index
    %c0_303 = arith.constant 0 : index
    %c0_304 = arith.constant 0 : index
    %412 = vector.load %arg6[%c9_302, %c0_303, %c0_304] : memref<14x8x128xf32, #tpu.memory_space<vmem>>, vector<1x8x128xf32>
    %413 = vector.shape_cast %412 : vector<1x8x128xf32> to vector<8x128xf32>
    %c9_305 = arith.constant 9 : index
    %c3_306 = arith.constant 3 : index
    %414 = memref.load %arg4[%c9_305, %c3_306] : memref<10x4xf32, #tpu.memory_space<smem>>
    %415 = vector.broadcast %414 : f32 to vector<8x128xf32>
    %416 = arith.mulf %413, %415 : vector<8x128xf32>
    %417 = arith.addf %411, %416 : vector<8x128xf32>
    %418 = arith.maximumf %355, %417 : vector<8x128xf32>
    %419 = arith.subf %355, %418 : vector<8x128xf32>
    %420 = math.exp %419 : vector<8x128xf32>
    %421 = arith.subf %417, %418 : vector<8x128xf32>
    %422 = math.exp %421 : vector<8x128xf32>
    %423 = arith.addf %420, %422 : vector<8x128xf32>
    %424 = math.log %423 : vector<8x128xf32>
    %425 = arith.addf %418, %424 : vector<8x128xf32>
    %426 = arith.subf %355, %425 : vector<8x128xf32>
    %c12 = arith.constant 12 : index
    %c0_307 = arith.constant 0 : index
    %c0_308 = arith.constant 0 : index
    %427 = vector.load %arg6[%c12, %c0_307, %c0_308] : memref<14x8x128xf32, #tpu.memory_space<vmem>>, vector<1x8x128xf32>
    %428 = vector.shape_cast %427 : vector<1x8x128xf32> to vector<8x128xf32>
    %429 = vector.shape_cast %426 : vector<8x128xf32> to vector<1x8x128xf32>
    tpu.vector_store %arg6[%c12, %c0_307, %c0_308], %429 {strides = array<i32>} : memref<14x8x128xf32, #tpu.memory_space<vmem>>, vector<1x8x128xf32>,
    %430 = arith.subf %417, %425 : vector<8x128xf32>
    %c13 = arith.constant 13 : index
    %c0_309 = arith.constant 0 : index
    %c0_310 = arith.constant 0 : index
    %431 = vector.load %arg6[%c13, %c0_309, %c0_310] : memref<14x8x128xf32, #tpu.memory_space<vmem>>, vector<1x8x128xf32>
    %432 = vector.shape_cast %431 : vector<1x8x128xf32> to vector<8x128xf32>
    %433 = vector.shape_cast %430 : vector<8x128xf32> to vector<1x8x128xf32>
    tpu.vector_store %arg6[%c13, %c0_309, %c0_310], %433 {strides = array<i32>} : memref<14x8x128xf32, #tpu.memory_space<vmem>>, vector<1x8x128xf32>,
    return
  }
  func.func @transform_0(%arg0: i32) -> (i32, i32, i32) {
    %c0_i32 = arith.constant 0 : i32
    %c0_i32_0 = arith.constant 0 : i32
    %c0_i32_1 = arith.constant 0 : i32
    return %c0_i32, %arg0, %c0_i32_0 : i32, i32, i32
  }
  func.func @transform_1(%arg0: i32) -> (i32, i32) {
    %c0_i32 = arith.constant 0 : i32
    %c0_i32_0 = arith.constant 0 : i32
    %c0_i32_1 = arith.constant 0 : i32
    return %c0_i32, %c0_i32_0 : i32, i32
  }
  func.func @transform_2(%arg0: i32) -> (i32, i32) {
    %c0_i32 = arith.constant 0 : i32
    %c0_i32_0 = arith.constant 0 : i32
    %c0_i32_1 = arith.constant 0 : i32
    return %c0_i32, %c0_i32_0 : i32, i32
  }
  func.func @transform_3(%arg0: i32) -> (i32, i32) {
    %c0_i32 = arith.constant 0 : i32
    %c0_i32_0 = arith.constant 0 : i32
    %c0_i32_1 = arith.constant 0 : i32
    return %c0_i32, %c0_i32_0 : i32, i32
  }
  func.func @transform_4(%arg0: i32) -> (i32, i32) {
    %c0_i32 = arith.constant 0 : i32
    %c0_i32_0 = arith.constant 0 : i32
    %c0_i32_1 = arith.constant 0 : i32
    return %c0_i32, %c0_i32_0 : i32, i32
  }
  func.func @transform_5(%arg0: i32) -> (i32, i32, i32) {
    %c0_i32 = arith.constant 0 : i32
    %c0_i32_0 = arith.constant 0 : i32
    %c0_i32_1 = arith.constant 0 : i32
    return %c0_i32, %arg0, %c0_i32_0 : i32, i32, i32
  }
}

</mosaic_0001>

<bundles_post_ra>
// kernel: tpu_custom_call.1
= control target key start
LH: loop header
LB: loop body
LE: loop exit
PB: predicated region body
PF: predicated region fallthrough
CT: control target
= control target key end

     0   :  { %s1770_s0 = inlined_call_operand.hbm [shape: f32[2,16,128], index: 0, kind: input, shape index: {}]   ;;  %s1771_s1 = inlined_call_operand.vmem [shape: f32[2,10], index: 1, kind: input, shape index: {}]   ;;  %s1772_s2 = inlined_call_operand.vmem [shape: f32[1,10], index: 2, kind: input, shape index: {}]   ;;  %s1773_s3 = inlined_call_operand.vmem [shape: f32[10,4], index: 3, kind: input, shape index: {}]   ;;  %s1774_s4 = inlined_call_operand.vmem [shape: f32[1,4], index: 4, kind: input, shape index: {}]   ;;  %s1775_s5 = inlined_call_operand.hbm [shape: f32[14,16,128], index: 5, kind: output, shape index: {}]  }
   0x1   :  { %1779 = sst [smem:[#allocation18_spill]] %s1770_s0 }
   0x2   :  { %1780 = sst [smem:[#allocation19_spill]] %s1771_s1 }
   0x3   :  { %1781 = sst [smem:[#allocation20_spill]] %s1772_s2 }
   0x4   :  { %10 = vsyncpa [#allocation3], 0 }
   0x5   :  { %12 = vsyncpa [#allocation3 + $0x1], 0 }
   0x6   :  { %13 = vsyncpa [#allocation5], 0 }
   0x7   :  { %14 = vsyncpa [#allocation8], 0 }
   0x8   :  { %15 = vsyncpa [#allocation11], 0 }
   0x9   :  { %16 = vsyncpa [#allocation4], 0 }
   0xa   :  { %18 = vsyncpa [#allocation4 + $0x1], 0  ;;  %s1215_s18 = smov 0   ;;  %s1217_s19 = smov 0  }
   0xb   :  { %s1219_s20 = smov 0   ;;  %s1221_s21 = smov 0  }
   0xc LB: > { %s1236_s22 = sadd.s32 4294967295, %s1171_s21   ;;  %s777_s23 = sadd.s32 4294967294, %s1171_s21   ;;  %s1171_s21 = sphi %s1221_s21, %s1806_s21   ;;  %s1167_s20 = sphi %s1219_s20, %s1805_s20   ;;  %s1163_s19 = sphi %s1217_s19, %s1804_s19   ;;  %s1159_s18 = sphi %s1215_s18, %s1803_s18  }
   0xd   : > { %p44_p0 = scmp.ne.s32.totalorder %s1163_s19, %s1159_s18  ;;  %p1776_p1 = scmp.eq.s32.totalorder %s1236_s22, 0 }
   0xe   : > { %p158_p3 = scmp.eq.s32.totalorder %s777_s23, 1  ;;  %p778_p5 = scmp.ge.s32.totalorder %s1171_s21, 1 }
   0xf   : > { %p1245_p4 = por %p1776_p1, %p44_p0  ;;  %p165_p7 = scmp.lt.s32.totalorder %s1171_s21, 3 }
  0x10   : > { %p1250_p6 = por %p158_p3, %p44_p0  ;;  %s1784_s2 = sld [smem:[#allocation20_spill]] }
  0x11   : > { %s1782_s24 = scalar_select %p1245_p4, 1, 0 }
  0x12   : > { %s1783_s25 = scalar_select %p1250_p6, 1, 0 }
  0x13   : > { %p1258_p8 = pnand %p778_p5, %p165_p7  ;;  %s1786_s1 = sld [smem:[#allocation19_spill]] }
  0x14   : > { %s199_s11 = sshll.u32 %s1773_s3, 4  ;;  %s1277_s11 = int_to_ptr.vmem [resolvable:$true] %s199_s11 }
  0x15   : > { %s1785_s29 = scalar_select %p1258_p8, 1, 0 }
  0x16   : > { %s189_s28 = sshll.u32 %s1784_s2, 4  ;;  %p918_p10 = pneg %p1258_p8  ;;  %s190_s28 = int_to_ptr.vmem [resolvable:$true] %s189_s28 }
  0x17   : > { %s1003_s12 = scalar_lea.vmem %s190_s28, 16  ;;  %p1011_p5 = scmp.lt.s32.totalorder %s190_s28, %s190_s28 }
  0x18   : > { %p1270_p11 = pnand %p918_p10, %p1776_p1  ;;  %p1004_p12 = scmp.ne.s32.totalorder %s190_s28, %s1003_s12 }
  0x19   : > { %s178_s7 = sshll.u32 %s1786_s1, 4  ;;  %p1012_p7 = scmp.lt.s32.totalorder %s1003_s12, %s1003_s12  ;;  %s179_s7 = int_to_ptr.vmem [resolvable:$true] %s178_s7 }
  0x1a   : > { %p1005_p13 = pneg %p1270_p11 }
  0x1b   : > { %p1013_p10 = por %p1012_p7, %p1011_p5 }
  0x1c   : > { %p1006_p0 = pnand %p1005_p13, %p1004_p12 }
  0x1e   : > { %p1007_p3 = pneg %p1006_p0 }
  0x20   : > { %p1014_p9 = pnand %p1013_p10, %p1007_p3 }
  0x22   : > { %1017 = shalt.err (!%p1014_p9)
}
  0x23   : > { %s1173_s13 = smov [#allocation7]   ;;  %s1018_s14 = scalar_lea.vmem %s179_s7, 32 }
  0x24   : > { %924 = dma.vmem_to_smem (!%p1270_p11), %s190_s28, 16, %s1173_s13, [#allocation8]  }
  0x25   : > { %p1019_p1 = scmp.ne.s32.totalorder %s179_s7, %s1018_s14  ;;  %p1026_p4 = scmp.lt.s32.totalorder %s179_s7, %s179_s7 }
  0x26   : > { %p1027_p8 = scmp.lt.s32.totalorder %s1018_s14, %s1018_s14 }
  0x27   : > { %p1021_p2 = pnand %p1019_p1, %p1005_p13 }
  0x28   : > { %p1028_p12 = por %p1027_p8, %p1026_p4 }
  0x29   : > { %p1022_p6 = pneg %p1021_p2 }
  0x2b   : > { %p1029_p0 = pnand %p1028_p12, %p1022_p6 }
  0x2d   : > { %1032 = shalt.err (!%p1029_p0)
}
  0x2e   : > { %s1174_s15 = smov [#allocation6]   ;;  %s213_s23 = sshll.u32 %s1774_s4, 4  ;;  %s214_s23 = int_to_ptr.vmem [resolvable:$true] %s213_s23 }
  0x2f   : > { %921 = dma.vmem_to_smem (!%p1270_p11), %s179_s7, 32, %s1174_s15, [#allocation5]  }
  0x30   : > { %s1033_s26 = scalar_lea.vmem %s1277_s11, 256  ;;  %p1041_p6 = scmp.lt.s32.totalorder %s1277_s11, %s1277_s11 }
  0x31   : > { %p1034_p1 = scmp.ne.s32.totalorder %s1277_s11, %s1033_s26  ;;  %p1042_p8 = scmp.lt.s32.totalorder %s1033_s26, %s1033_s26 }
  0x33   : > { %p1036_p2 = pnand %p1034_p1, %p1005_p13  ;;  %p1043_p9 = por %p1042_p8, %p1041_p6 }
  0x35   : > { %p1037_p4 = pneg %p1036_p2 }
  0x37   : > { %p1044_p3 = pnand %p1043_p9, %p1037_p4 }
  0x39   : > { %1047 = shalt.err (!%p1044_p3)
}
  0x3a   : > { %s1175_s27 = smov [#allocation9]   ;;  %s1176_s28 = smov 128  }
  0x3b   : > { %s1177_s30 = smov 8   ;;  %s1048_s6 = scalar_lea.vmem %s214_s23, 16 }
  0x3c   : > { %927 = dma.vmem_to_smem (!%p1270_p11), %s1277_s11, 256, %s1175_s27, [#allocation8], %s1176_s28, %s1176_s28, %s1177_s30  }
  0x3d   : > { %p1049_p5 = scmp.ne.s32.totalorder %s214_s23, %s1048_s6  ;;  %p1056_p12 = scmp.lt.s32.totalorder %s214_s23, %s214_s23 }
  0x3e   : > { %p1057_p0 = scmp.lt.s32.totalorder %s1048_s6, %s1048_s6 }
  0x3f   : > { %p1051_p7 = pnand %p1049_p5, %p1005_p13 }
  0x40   : > { %p1058_p1 = por %p1057_p0, %p1056_p12 }
  0x41   : > { %p1052_p10 = pneg %p1051_p7 }
  0x43   : > { %p1059_p2 = pnand %p1058_p1, %p1052_p10 }
  0x45   : > { %1062 = shalt.err (!%p1059_p2)
}
  0x46   : > { %s1178_s7 = smov [#allocation10]   ;;  %s1313_s9 = sadd.s32 1, %s1171_s21  }
  0x47   : > { %930 = dma.vmem_to_smem (!%p1270_p11), %s214_s23, 16, %s1178_s7, [#allocation11]  }
  0x48   : > { %s28_s10 = ssub.s32 %s1171_s21, %s1313_s9  ;;  %s31_s11 = sadd.s32 1, %s1167_s20 }
  0x49   : > { %p29_p13 = scmp.eq.s32.totalorder %s28_s10, 0  ;;  %p38_p4 = scmp.ne.s32.totalorder %s1167_s20, %s1163_s19 }
  0x4a   : > { %p39_p6 = scmp.eq.s32.totalorder %s1171_s21, 0  ;;  %p1788_p9 = scmp.eq.s32.totalorder %s1236_s22, 1 }
  0x4b   : > { %s1322_s8 = scalar_select %p29_p13, %s1167_s20, %s31_s11  }
  0x4c   : > { %p40_p8 = por %p39_p6, %p38_p4  ;;  %p1326_p3 = por %p1788_p9, %p38_p4 }
  0x4d   : > { %p943_p5 = scmp.lt.s32.totalorder %s1171_s21, 2  ;;  %s224_s13 = sand.u32 1, %s1167_s20  }
  0x4e   : > { %s784_s14 = sshll.u32 %s224_s13, 4  ;;  %s785_s15 = sshll.u32 %s1171_s21, 7 }
  0x4f   : > { %s1790_s0 = sld [smem:[#allocation18_spill]]  ;;  %s228_s26 = scalar_lea.vmem [#allocation2], %s784_s14 }
  0x50   : > { %s234_s27 = sshll.u32 %s228_s26, 4  ;;  %p1340_p11 = pnand %p943_p5, %p40_p8  ;;  %s1338_s27 = int_to_ptr.vmem [resolvable:$true] %s234_s27 }
  0x51   : > { %s1344_s7 = scalar_lea.sflag [#allocation3], %s224_s13 }
  0x52   : > { %p1065_p10 = pneg %p1340_p11 }
  0x55   : > { %s1336_s23 = scalar_lea.hbm %s1790_s0, %s785_s15  ;;  %s1068_s15 = scalar_lea.hbm %s1790_s0, 512 }
  0x56   : > { %s1063_s10 = scalar_lea.hbm %s1336_s23, 256  ;;  %p1069_p1 = scmp.lt.u32.totalorder %s1336_s23, %s1790_s0 }
  0x57   : > { %p1064_p7 = scmp.ne.s32.totalorder %s1336_s23, %s1063_s10  ;;  %p1070_p2 = scmp.lt.u32.totalorder %s1068_s15, %s1063_s10 }
  0x58   : > { %p1072_p4 = scmp.lt.u32.totalorder %s1063_s10, %s1336_s23 }
  0x59   : > { %p1066_p12 = pnand %p1065_p10, %p1064_p7  ;;  %p1071_p13 = por %p1070_p2, %p1069_p1 }
  0x5b   : > { %p1067_p0 = pneg %p1066_p12  ;;  %p1073_p6 = por %p1072_p4, %p1071_p13 }
  0x5d   : > { %p1074_p8 = pnand %p1073_p6, %p1067_p0 }
  0x5f   : > { %1077 = shalt.err (!%p1074_p8)
}
  0x60   : > { %s1078_s13 = scalar_lea.vmem %s1338_s27, 256  ;;  %s1179_s26 = smov [#allocation2]  }
  0x61   : > { %p1079_p9 = scmp.ne.s32.totalorder %s1338_s27, %s1078_s13  ;;  %s1083_s11 = sshll.u32 %s1179_s26, 4  ;;  %s1084_s11 = int_to_ptr.vmem [resolvable:$false] %s1083_s11 }
  0x62   : > { %s1085_s14 = scalar_lea.vmem %s1084_s11, 512  ;;  %p1086_p12 = scmp.lt.s32.totalorder %s1338_s27, %s1084_s11 }
  0x63   : > { %p1081_p5 = pnand %p1079_p9, %p1065_p10  ;;  %p1087_p1 = scmp.lt.s32.totalorder %s1085_s14, %s1078_s13 }
  0x65   : > { %p1082_p7 = pneg %p1081_p5  ;;  %p1088_p2 = por %p1087_p1, %p1086_p12 }
  0x67   : > { %p1089_p13 = pnand %p1088_p2, %p1082_p7 }
  0x69   : > { %1092 = shalt.err (!%p1089_p13)
}
  0x6a   : > { %s1180_s10 = smov 256   ;;  %p1792_p10 = scmp.ne.s32.totalorder %s1785_s29, 0 }
  0x6b   : > { %934 = dma.hbm_to_vmem [thread:$0]  (!%p1340_p11), %s1336_s23, 256, %s1338_s27, %s1344_s7, %s1180_s10, %s1176_s28, %s1177_s30  }
  0x6c   : > { %246 = sbr.rel (%p1792_p10) target bundleno = 249 (0xf9), region = 40  ;;  %s1377_s15 = sand.u32 (!%p1792_p10), 1, %s1163_s19  }
  0x6d   : > { %s787_s16 = sshll.u32 (!%p1792_p10), %s1377_s15, 4  ;;  %s249_s17 = scalar_lea.sflag (!%p1792_p10), [#allocation3], %s1377_s15 }
  0x6e   : > { %s252_s13 = scalar_lea.vmem (!%p1792_p10), [#allocation2], %s787_s16  ;;  %p1793_p0 = scmp.ne.s32.totalorder (!%p1792_p10), %s1782_s24, 0 }
  0x73   : > { %1138 = dma.done.wait (%p1793_p0), %s249_s17, 256  }
  0x74   : > { %1140 = vsyncadd (%p1793_p0), %s249_s17, 4294967040  ;;  %p1794_p4 = scmp.eq.s32.totalorder %s1236_s22, 0 }
  0x76   : > { %1142 = dma.done.wait (%p1794_p4), [#allocation5], 32   ;;  %p1795_p11 = pmov %p1794_p4 }
  0x77   : > { %p1796_p6 = pmov %p1794_p4 }
  0x78   : > { %1144 = vsyncadd (%p1795_p11), [#allocation5], 4294967264 }
  0x79   : > { %1146 = dma.done.wait (%p1796_p6), [#allocation8], 272   ;;  %p1797_p8 = pmov %p1794_p4 }
  0x7a   : > { %p1798_p9 = pmov %p1794_p4 }
  0x7b   : > { %1148 = vsyncadd (%p1797_p8), [#allocation8], 4294967024 }
  0x7c   : > { %1150 = dma.done.wait (%p1798_p9), [#allocation11], 16   ;;  %p1799_p5 = pmov %p1794_p4 }
  0x7e   : > { %1152 = vsyncadd (%p1799_p5), [#allocation11], 4294967280 }
  0x7f   : > { %273 = sfence }
  0x80   : > { %s299_s29 = sld [smem:[#allocation6]]  ;;  %s794_s23 = sld [smem:[#allocation6 + $0x1]]  ;;  %v1400_v0 = vld [vmem:[%s252_s13] sm:$0xff]  ;;  %v1404_v1 = vld [vmem:[%s252_s13 + $0x8] sm:$0xff] }
  0x81   : > { %s302_s28 = sld [smem:[#allocation7]]  ;;  %s1398_s27 = sld [smem:[#allocation7 + $0x1]] }
  0x82   : > { %s793_s30 = sld [smem:[#allocation6 + $0x80]]  ;;  %s796_s6 = sld [smem:[#allocation6 + $0x81]] }
  0x83   : > { %s798_s7 = sld [smem:[#allocation6 + $0x2]]  ;;  %s1408_s14 = sld [smem:[#allocation6 + $0x3]] }
  0x84   : > { %s1402_s26 = sld [smem:[#allocation7 + $0x2]]  ;;  %s1410_s10 = sld [smem:[#allocation7 + $0x3]] }
  0x85   : > { %s1406_s11 = sld [smem:[#allocation6 + $0x82]]  ;;  %s1412_s16 = sld [smem:[#allocation6 + $0x83]] }
  0x86   : > { %v300_v2 = vstv %s299_s29  ;;  %s1415_s17 = sld [smem:[#allocation6 + $0x4]]  ;;  %v312_v7 = vstv %s794_s23  ;;  %s1422_s29 = sld [smem:[#allocation6 + $0x5]] }
  0x87   : > { %v301_v3 = vmul.f32 %v300_v2, %v1400_v0  ;;  %v303_v4 = vstv %s302_s28  ;;  %s1417_s24 = sld [smem:[#allocation7 + $0x4]]  ;;  %v313_v9 = vmul.f32 %v312_v7, %v1400_v0  ;;  %v315_v10 = vstv %s1398_s27  ;;  %s1426_s28 = sld [smem:[#allocation7 + $0x5]] }
  0x88   : > { %v306_v5 = vstv %s793_s30  ;;  %s1420_s13 = sld [smem:[#allocation6 + $0x84]]  ;;  %v318_v11 = vstv %s796_s6  ;;  %s1428_s30 = sld [smem:[#allocation6 + $0x85]] }
  0x89   : > { %v307_v6 = vmul.f32 %v1404_v1, %v306_v5  ;;  %v304_v8 = vadd.f32 %v303_v4, %v301_v3  ;;  %v319_v12 = vmul.f32 %v1404_v1, %v318_v11  ;;  %v325_v13 = vstv %s798_s7  ;;  %s1432_s23 = sld [smem:[#allocation6 + $0x6]]  ;;  %s1440_s6 = sld [smem:[#allocation6 + $0x7]] }
  0x8a   : > { %v328_v14 = vstv %s1402_s26  ;;  %s1434_s0 = sld [smem:[#allocation7 + $0x6]]  ;;  %v316_v16 = vadd.f32 %v315_v10, %v313_v9  ;;  %v326_v17 = vmul.f32 %v325_v13, %v1400_v0  ;;  %v338_v20 = vstv %s1408_s14  ;;  %s1446_s7 = sld [smem:[#allocation7 + $0x7]] }
  0x8b   : > { %v308_v15 = vadd.f32 %v307_v6, %v304_v8  ;;  %v331_v18 = vstv %s1406_s11  ;;  %s1438_s27 = sld [smem:[#allocation6 + $0x86]]  ;;  %v341_v21 = vstv %s1410_s10  ;;  %v344_v22 = vstv %s1412_s16  ;;  %s1448_s26 = sld [smem:[#allocation6 + $0x87]] }
  0x8c   : > { %v332_v19 = vmul.f32 %v1404_v1, %v331_v18  ;;  %v320_v24 = vadd.f32 %v319_v12, %v316_v16  ;;  %v329_v25 = vadd.f32 %v328_v14, %v326_v17  ;;  %v339_v26 = vmul.f32 %v338_v20, %v1400_v0  ;;  %s1453_s11 = sld [smem:[#allocation6 + $0x8]]  ;;  %s1800_s16 = smul.u32 112, %s1377_s15 }
  0x8d   : > { %v1450_v23 = vmax.f32 %v308_v15, 0.0  ;;  %v345_v27 = vmul.f32 %v1404_v1, %v344_v22  ;;  %v351_v28 = vstv %s1415_s17  ;;  %v354_v29 = vstv %s1417_s24  ;;  %s1459_s14 = sld [smem:[#allocation7 + $0x8]]  ;;  %s1472_s24 = sld [smem:[#allocation6 + $0x9]] }
  0x8e   : > { %v357_v30 = vstv %s1420_s13  ;;  %s1461_s10 = sld [smem:[#allocation6 + $0x88]]  ;;  %s1465_s1 = scalar_lea.vmem [#allocation12], %s1800_s16  ;;  %v1469_v31 = vmax.f32 %v320_v24, 0.0  ;;  %v333_v32 = vadd.f32 %v332_v19, %v329_v25  ;;  %v342_v33 = vadd.f32 %v341_v21, %v339_v26 }
  0x8f   : > { %310 = vst [vmem:[%s1465_s1] sm:$0xff] %v1450_v23  ;;  %v352_v34 = vmul.f32 %v351_v28, %v1400_v0  ;;  %v358_v35 = vmul.f32 %v1404_v1, %v357_v30  ;;  %v364_v36 = vstv %s1422_s29  ;;  %v367_v37 = vstv %s1426_s28  ;;  %s1478_s17 = sld [smem:[#allocation7 + $0x9]]  ;;  %s1487_s16 = sld [smem:[#allocation9]] }
  0x90   : > { %v370_v38 = vstv %s1428_s30  ;;  %s1480_s13 = sld [smem:[#allocation6 + $0x89]]  ;;  %797 = vst [vmem:[%s1465_s1 + $0x8] sm:$0xff] %v1469_v31  ;;  %v1484_v39 = vmax.f32 %v333_v32, 0.0  ;;  %v346_v40 = vadd.f32 %v345_v27, %v342_v33  ;;  %v365_v42 = vmul.f32 %v364_v36, %v1400_v0  ;;  %s1493_s29 = sld [smem:[#allocation10]] }
  0x91   : > { %v355_v41 = vadd.f32 %v354_v29, %v352_v34  ;;  %v371_v43 = vmul.f32 %v1404_v1, %v370_v38  ;;  %v377_v44 = vstv %s1432_s23  ;;  %v380_v45 = vstv %s1434_s0  ;;  %s1495_s28 = sld [smem:[#allocation9 + $0x80]]  ;;  %s1606_s2 = sld [smem:[#allocation9 + $0x182]] }
  0x92   : > { %v383_v46 = vstv %s1438_s27  ;;  %801 = vst [vmem:[%s1465_s1 + $0x10] sm:$0xff] %v1484_v39  ;;  %v1499_v47 = vmax.f32 %v346_v40, 0.0  ;;  %v368_v49 = vadd.f32 %v367_v37, %v365_v42  ;;  %v378_v50 = vmul.f32 %v377_v44, %v1400_v0  ;;  %s1502_s30 = sld [smem:[#allocation9 + $0x100]] }
  0x93   : > { %v359_v48 = vadd.f32 %v358_v35, %v355_v41  ;;  %v384_v51 = vmul.f32 %v1404_v1, %v383_v46  ;;  %v390_v52 = vstv %s1440_s6  ;;  %v393_v53 = vstv %s1446_s7  ;;  %s1508_s0 = sld [smem:[#allocation9 + $0x180]]  ;;  %s1534_s7 = sld [smem:[#allocation9 + $0x1]] }
  0x94   : > { %v396_v54 = vstv %s1448_s26  ;;  %s1510_s23 = sld [smem:[#allocation9 + $0x200]]  ;;  %805 = vst [vmem:[%s1465_s1 + $0x18] sm:$0xff] %v1499_v47  ;;  %v372_v56 = vadd.f32 %v371_v43, %v368_v49  ;;  %v381_v57 = vadd.f32 %v380_v45, %v378_v50  ;;  %v391_v58 = vmul.f32 %v390_v52, %v1400_v0 }
  0x95   : > { %v1514_v55 = vmax.f32 %v359_v48, 0.0  ;;  %v397_v59 = vmul.f32 %v1404_v1, %v396_v54  ;;  %v403_v60 = vstv %s1453_s11  ;;  %v406_v61 = vstv %s1459_s14  ;;  %s1521_s27 = sld [smem:[#allocation9 + $0x280]]  ;;  %s1543_s11 = sld [smem:[#allocation10 + $0x1]] }
  0x96   : > { %v409_v62 = vstv %s1461_s10  ;;  %v1525_v63 = vmax.f32 %v372_v56, 0.0  ;;  %v385_v2 = vadd.f32 %v384_v51, %v381_v57  ;;  %v394_v3 = vadd.f32 %v393_v53, %v391_v58  ;;  %s1532_s6 = sld [smem:[#allocation9 + $0x300]]  ;;  %s1549_s14 = sld [smem:[#allocation9 + $0x81]] }
  0x97   : > { %809 = vst [vmem:[%s1465_s1 + $0x20] sm:$0xff] %v1514_v55  ;;  %v404_v4 = vmul.f32 %v403_v60, %v1400_v0  ;;  %v410_v5 = vmul.f32 %v1404_v1, %v409_v62  ;;  %v416_v6 = vstv %s1472_s24  ;;  %v419_v7 = vstv %s1478_s17  ;;  %s1541_s26 = sld [smem:[#allocation9 + $0x380]]  ;;  %s1551_s10 = sld [smem:[#allocation9 + $0x101]] }
  0x98   : > { %v422_v8 = vstv %s1480_s13  ;;  %813 = vst [vmem:[%s1465_s1 + $0x28] sm:$0xff] %v1525_v63  ;;  %v1538_v9 = vmax.f32 %v385_v2, 0.0  ;;  %v398_v10 = vadd.f32 %v397_v59, %v394_v3  ;;  %v417_v12 = vmul.f32 %v416_v6, %v1400_v0  ;;  %s1558_s24 = sld [smem:[#allocation9 + $0x400]]  ;;  %s1560_s17 = sld [smem:[#allocation9 + $0x181]] }
  0x99   : > { %v407_v11 = vadd.f32 %v406_v61, %v404_v4  ;;  %v423_v13 = vmul.f32 %v1404_v1, %v422_v8  ;;  %v430_v14 = vstv %s1487_s16  ;;  %v433_v15 = vstv %s1493_s29  ;;  %s1566_s13 = sld [smem:[#allocation9 + $0x201]]  ;;  %s1576_s29 = sld [smem:[#allocation9 + $0x480]] }
  0x9a   : > { %v437_v16 = vstv %s1495_s28  ;;  %817 = vst [vmem:[%s1465_s1 + $0x30] sm:$0xff] %v1538_v9  ;;  %v1555_v0 = vmax.f32 %v398_v10, 0.0  ;;  %v420_v18 = vadd.f32 %v419_v7, %v417_v12  ;;  %v431_v19 = vmul.f32 %v430_v14, %v1450_v23  ;;  %s1568_s16 = sld [smem:[#allocation9 + $0x281]] }
  0x9b   : > { %v411_v17 = vadd.f32 %v410_v5, %v407_v11  ;;  %v438_v1 = vmul.f32 %v437_v16, %v1469_v31  ;;  %v442_v20 = vstv %s1502_s30  ;;  %v447_v21 = vstv %s1508_s0  ;;  %s1583_s28 = sld [smem:[#allocation9 + $0x301]]  ;;  %s1587_s30 = sld [smem:[#allocation9 + $0x2]] }
  0x9c   : > { %v452_v22 = vstv %s1510_s23  ;;  %821 = vst [vmem:[%s1465_s1 + $0x38] sm:$0xff] %v1555_v0  ;;  %v424_v25 = vadd.f32 %v423_v13, %v420_v18  ;;  %v434_v26 = vadd.f32 %v433_v15, %v431_v19  ;;  %v443_v27 = vmul.f32 %v442_v20, %v1484_v39  ;;  %s1589_s0 = sld [smem:[#allocation10 + $0x2]] }
  0x9d   : > { %v1572_v24 = vmax.f32 %v411_v17, 0.0  ;;  %v457_v28 = vstv %s1521_s27  ;;  %v448_v32 = vmul.f32 %v447_v21, %v1499_v47  ;;  %v453_v33 = vmul.f32 %v452_v22, %v1514_v55  ;;  %s1596_s23 = sld [smem:[#allocation9 + $0x82]] }
  0x9e   : > { %v1580_v29 = vmax.f32 %v424_v25, 0.0  ;;  %v439_v30 = vadd.f32 %v438_v1, %v434_v26  ;;  %v481_v34 = vstv %s1534_s7  ;;  %v458_v36 = vmul.f32 %v457_v28, %v1525_v63  ;;  %s1598_s27 = sld [smem:[#allocation9 + $0x102]]  ;;  %s1604_s7 = sld [smem:[#allocation9 + $0x381]] }
  0x9f   : > { %825 = vst [vmem:[%s1465_s1 + $0x40] sm:$0xff] %v1572_v24  ;;  %v462_v37 = vstv %s1532_s6  ;;  %v467_v38 = vstv %s1541_s26  ;;  %v482_v40 = vmul.f32 %v481_v34, %v1450_v23  ;;  %v484_v41 = vstv %s1543_s11  ;;  %s1611_s6 = sld [smem:[#allocation9 + $0x401]]  ;;  %s1616_s26 = sld [smem:[#allocation9 + $0x202]] }
  0xa0   : > { %829 = vst [vmem:[%s1465_s1 + $0x48] sm:$0xff] %v1580_v29  ;;  %v444_v35 = vadd.f32 %v443_v27, %v439_v30  ;;  %v487_v42 = vstv %s1549_s14  ;;  %v491_v43 = vstv %s1551_s10  ;;  %v472_v45 = vstv %s1558_s24  ;;  %s1619_s11 = sld [smem:[#allocation9 + $0x282]]  ;;  %s1624_s14 = sld [smem:[#allocation9 + $0x481]] }
  0xa1   : > { %v488_v46 = vmul.f32 %v487_v42, %v1469_v31  ;;  %v495_v48 = vstv %s1560_s17  ;;  %v485_v49 = vadd.f32 %v484_v41, %v482_v40  ;;  %v492_v50 = vmul.f32 %v491_v43, %v1484_v39  ;;  %s1629_s10 = sld [smem:[#allocation9 + $0x302]]  ;;  %s1634_s24 = sld [smem:[#allocation9 + $0x3]] }
  0xa2   : > { %v449_v44 = vadd.f32 %v448_v32, %v444_v35  ;;  %v499_v51 = vstv %s1566_s13  ;;  %v503_v52 = vstv %s1568_s16  ;;  %v463_v54 = vmul.f32 %v462_v37, %v1538_v9  ;;  %s1636_s17 = sld [smem:[#allocation10 + $0x3]] }
  0xa3   : > { %v468_v56 = vmul.f32 %v467_v38, %v1555_v0  ;;  %v477_v57 = vstv %s1576_s29  ;;  %v489_v58 = vadd.f32 %v488_v46, %v485_v49  ;;  %v496_v59 = vmul.f32 %v495_v48, %v1499_v47  ;;  %s1641_s13 = sld [smem:[#allocation9 + $0x83]] }
  0xa4   : > { %v454_v53 = vadd.f32 %v453_v33, %v449_v44  ;;  %v473_v61 = vmul.f32 %v472_v45, %v1572_v24  ;;  %v500_v62 = vmul.f32 %v499_v51, %v1514_v55  ;;  %v504_v2 = vmul.f32 %v503_v52, %v1525_v63  ;;  %s1643_s16 = sld [smem:[#allocation9 + $0x103]] }
  0xa5   : > { %v493_v3 = vadd.f32 %v492_v50, %v489_v58  ;;  %v507_v4 = vstv %s1583_s28  ;;  %v541_v5 = vstv %s1587_s30  ;;  %v544_v6 = vstv %s1589_s0  ;;  %s1648_s29 = sld [smem:[#allocation9 + $0x183]]  ;;  %s1654_s28 = sld [smem:[#allocation9 + $0x382]] }
  0xa6   : > { %v459_v60 = vadd.f32 %v458_v36, %v454_v53  ;;  %v542_v8 = vmul.f32 %v541_v5, %v1450_v23  ;;  %v548_v10 = vstv %s1596_s23  ;;  %v553_v11 = vstv %s1598_s27  ;;  %s1656_s30 = sld [smem:[#allocation9 + $0x203]]  ;;  %s1669_s0 = sld [smem:[#allocation9 + $0x402]] }
  0xa7   : > { %v497_v12 = vadd.f32 %v496_v59, %v493_v3  ;;  %v511_v13 = vstv %s1604_s7  ;;  %v549_v14 = vmul.f32 %v548_v10, %v1469_v31  ;;  %v558_v15 = vstv %s1606_s2  ;;  %s1664_s2 = sld [smem:[#allocation9 + $0x283]]  ;;  %s1679_s27 = sld [smem:[#allocation9 + $0x482]] }
  0xa8   : > { %v464_v7 = vadd.f32 %v463_v54, %v459_v60  ;;  %v515_v17 = vstv %s1611_s6  ;;  %v545_v18 = vadd.f32 %v544_v6, %v542_v8  ;;  %v554_v19 = vmul.f32 %v553_v11, %v1484_v39  ;;  %s1673_s23 = sld [smem:[#allocation9 + $0x303]] }
  0xa9   : > { %v501_v1 = vadd.f32 %v500_v62, %v497_v12  ;;  %v508_v20 = vmul.f32 %v507_v4, %v1538_v9  ;;  %v563_v21 = vstv %s1616_s26  ;;  %v478_v22 = vmul.f32 %v477_v57, %v1580_v29  ;;  %s1683_s7 = sld [smem:[#allocation9 + $0x383]] }
  0xaa   : > { %v469_v16 = vadd.f32 %v468_v56, %v464_v7  ;;  %v550_v25 = vadd.f32 %v549_v14, %v545_v18  ;;  %v559_v26 = vmul.f32 %v558_v15, %v1499_v47  ;;  %v568_v27 = vstv %s1619_s11  ;;  %s1691_s6 = sld [smem:[#allocation9 + $0x403]]  ;;  %s894_s11 = sshll.u32 %s1236_s22, 7 }
  0xab   : > { %v505_v28 = vadd.f32 %v504_v2, %v501_v1  ;;  %v512_v30 = vmul.f32 %v511_v13, %v1555_v0  ;;  %v516_v32 = vmul.f32 %v515_v17, %v1572_v24  ;;  %v519_v33 = vstv %s1624_s14  ;;  %s1695_s26 = sld [smem:[#allocation9 + $0x483]]  ;;  %s663_s14 = sshll.u32 %s1465_s1, 4  ;;  %s1724_s14 = int_to_ptr.vmem [resolvable:$true] %s663_s14 }
  0xac   : > { %v474_v34 = vadd.f32 %v473_v61, %v469_v16  ;;  %v555_v35 = vadd.f32 %v554_v19, %v550_v25  ;;  %v564_v36 = vmul.f32 %v563_v21, %v1514_v55  ;;  %v573_v37 = vstv %s1629_s10  ;;  %s1181_s22 = smov [#allocation12]  }
  0xad   : > { %v509_v38 = vadd.f32 %v508_v20, %v505_v28  ;;  %v569_v40 = vmul.f32 %v568_v27, %v1525_v63  ;;  %v592_v41 = vstv %s1634_s24  ;;  %v595_v42 = vstv %s1636_s17  ;;  %s1722_s17 = scalar_lea.hbm %s1775_s5, %s894_s11 }
  0xae   : > { %v560_v43 = vadd.f32 %v559_v26, %v555_v35  ;;  %v593_v44 = vmul.f32 %v592_v41, %v1450_v23  ;;  %v598_v45 = vstv %s1641_s13  ;;  %v602_v46 = vstv %s1643_s16  ;;  %s651_s13 = scalar_lea.sflag [#allocation4], %s1377_s15  ;;  %s1093_s16 = scalar_lea.vmem %s1724_s14, 1792 }
  0xaf   : > { %v513_v48 = vadd.f32 %v512_v30, %v509_v38  ;;  %v520_v49 = vmul.f32 %v519_v33, %v1580_v29  ;;  %v599_v50 = vmul.f32 %v598_v45, %v1469_v31  ;;  %v606_v51 = vstv %s1648_s29  ;;  %p1094_p7 = scmp.ne.s32.totalorder %s1724_s14, %s1093_s16  ;;  %s1097_s29 = sshll.u32 %s1181_s22, 4  ;;  %s1098_s29 = int_to_ptr.vmem [resolvable:$false] %s1097_s29 }
  0xb0   : > { %v565_v52 = vadd.f32 %v564_v36, %v560_v43  ;;  %v574_v53 = vmul.f32 %v573_v37, %v1538_v9  ;;  %v596_v54 = vadd.f32 %v595_v42, %v593_v44  ;;  %v603_v23 = vmul.f32 %v602_v46, %v1484_v39  ;;  %p1100_p2 = scmp.lt.s32.totalorder %s1724_s14, %s1098_s29 }
  0xb1   : > { %v1687_v56 = vadd.f32 %v478_v22, %v474_v34  ;;  %v517_v57 = vadd.f32 %v516_v32, %v513_v48  ;;  %v578_v58 = vstv %s1654_s28  ;;  %v610_v59 = vstv %s1656_s30  ;;  %p1095_p12 = pnand %p1094_p7, %p1326_p3  ;;  %s1099_s28 = scalar_lea.vmem %s1098_s29, 3584 }
  0xb2   : > { %v570_v31 = vadd.f32 %v569_v40, %v565_v52  ;;  %v600_v60 = vadd.f32 %v599_v50, %v596_v54  ;;  %v607_v61 = vmul.f32 %v606_v51, %v1499_v47  ;;  %v614_v2 = vstv %s1664_s2  ;;  %p1101_p13 = scmp.lt.s32.totalorder %s1099_s28, %s1093_s16 }
  0xb3   : > { %v521_v62 = vadd.f32 %v520_v49, %v517_v57  ;;  %v579_v3 = vmul.f32 %v578_v58, %v1555_v0  ;;  %v611_v5 = vmul.f32 %v610_v59, %v1514_v55  ;;  %v583_v7 = vstv %s1669_s0  ;;  %p1096_p1 = pneg %p1095_p12 }
  0xb4   : > { %v575_v39 = vadd.f32 %v574_v53, %v570_v31  ;;  %v604_v4 = vadd.f32 %v603_v23, %v600_v60  ;;  %v618_v8 = vstv %s1673_s23  ;;  %v615_v11 = vmul.f32 %v614_v2, %v1525_v63  ;;  %p1102_p10 = por %p1101_p13, %p1100_p2 }
  0xb5   : > { %v522_v6 = vmax.f32 %v1687_v56, %v521_v62  ;;  %v588_v13 = vstv %s1679_s27  ;;  %v622_v14 = vstv %s1683_s7  ;;  %v584_v16 = vmul.f32 %v583_v7, %v1572_v24 }
  0xb6   : > { %v608_v10 = vadd.f32 %v607_v61, %v604_v4  ;;  %v580_v15 = vadd.f32 %v579_v3, %v575_v39  ;;  %v619_v55 = vmul.f32 %v618_v8, %v1538_v9  ;;  %v626_v1 = vstv %s1691_s6  ;;  %p1103_p0 = pnand %p1102_p10, %p1096_p1 }
  0xb7   : > { %v523_v47 = vsub.f32 %v1687_v56, %v522_v6  ;;  %v526_v12 = vsub.f32 %v521_v62, %v522_v6  ;;  %v623_v21 = vmul.f32 %v622_v14, %v1555_v0  ;;  %v589_v63 = vmul.f32 %v588_v13, %v1580_v29 }
  0xb8   : > { %v612_v17 = vadd.f32 %v611_v5, %v608_v10  ;;  %v630_v22 = vstv %s1695_s26  ;;  %v585_v25 = vadd.f32 %v584_v16, %v580_v15  ;;  %v627_v27 = vmul.f32 %v626_v1, %v1572_v24 }
  0xb9   : > { %v524_v18 = vmul.f32 1.442695, %v523_v47  ;;  %v527_v19 = vmul.f32 1.442695, %v526_v12  ;;  %v631_v30 = vmul.f32 %v630_v22, %v1580_v29 }
  0xba   : > { %v616_v20 = vadd.f32 %v615_v11, %v612_v17  ;;  %v590_v32 = vadd.f32 %v589_v63, %v585_v25 }
  0xbb   : > { %991 = vpow2.f32 %v524_v18 }
  0xbc   : > { %993 = vpow2.f32 %v527_v19  ;;  %v620_v26 = vadd.f32 %v619_v55, %v616_v20 }
  0xbe   : > { %v624_v28 = vadd.f32 %v623_v21, %v620_v26 }
  0xc0   : > { %v628_v9 = vadd.f32 %v627_v27, %v624_v28 }
  0xc2   : > { %v632_v33 = vadd.f32 %v631_v30, %v628_v9 }
  0xc4   : > { %v633_v34 = vmax.f32 %v590_v32, %v632_v33 }
  0xc5   : > { %v992_v35 = vpop.eup %991 }
  0xc6   : > { %v994_v36 = vpop.eup %993  ;;  %v634_v37 = vsub.f32 %v590_v32, %v633_v34  ;;  %v637_v0 = vsub.f32 %v632_v33, %v633_v34 }
  0xc7   : > { %v529_v38 = vadd.f32 %v994_v36, %v992_v35 }
  0xc8   : > { %v635_v40 = vmul.f32 1.442695, %v634_v37  ;;  %v638_v41 = vmul.f32 1.442695, %v637_v0 }
  0xc9   : > { %995 = vlog2.f32 %v529_v38 }
  0xca   : > { %997 = vpow2.f32 %v635_v40 }
  0xcb   : > { %999 = vpow2.f32 %v638_v41 }
  0xd3   : > { %v996_v24 = vpop.eup %995 }
  0xd4   : > { %v998_v29 = vpop.eup %997  ;;  %v531_v42 = vmul.f32 0.6931472, %v996_v24 }
  0xd5   : > { %v1000_v43 = vpop.eup %999 }
  0xd6   : > { %v532_v44 = vadd.f32 %v531_v42, %v522_v6  ;;  %v640_v45 = vadd.f32 %v1000_v43, %v998_v29 }
  0xd8   : > { %v533_v46 = vsub.f32 %v1687_v56, %v532_v44  ;;  %v536_v48 = vsub.f32 %v521_v62, %v532_v44  ;;  %1001 = vlog2.f32 %v640_v45 }
  0xda   : > { %859 = vst [vmem:[%s1465_s1 + $0x50] sm:$0xff] %v533_v46  ;;  %860 = vst [vmem:[%s1465_s1 + $0x58] sm:$0xff] %v536_v48 }
  0xe2   : > { %v1002_v49 = vpop.eup %1001 }
  0xe3   : > { %v642_v50 = vmul.f32 0.6931472, %v1002_v49 }
  0xe5   : > { %v643_v51 = vadd.f32 %v642_v50, %v633_v34 }
  0xe7   : > { %v644_v52 = vsub.f32 %v590_v32, %v643_v51  ;;  %v647_v53 = vsub.f32 %v632_v33, %v643_v51 }
  0xe9   : > { %892 = vst [vmem:[%s1465_s1 + $0x60] sm:$0xff] %v644_v52  ;;  %893 = vst [vmem:[%s1465_s1 + $0x68] sm:$0xff] %v647_v53 }
  0xea   : > { %1106 = shalt.err (!%p1103_p0)
}
  0xeb   : > { %s1107_s1 = scalar_lea.hbm %s1722_s17, 1792  ;;  %s1111_s0 = scalar_lea.hbm %s1775_s5, 3584 }
  0xec   : > { %p1108_p4 = scmp.ne.s32.totalorder %s1722_s17, %s1107_s1  ;;  %p1112_p8 = scmp.lt.u32.totalorder %s1722_s17, %s1775_s5 }
  0xed   : > { %p1113_p9 = scmp.lt.u32.totalorder %s1111_s0, %s1107_s1  ;;  %p1115_p7 = scmp.lt.u32.totalorder %s1107_s1, %s1722_s17 }
  0xee   : > { %p1109_p11 = pnand %p1108_p4, %p1326_p3 }
  0xef   : > { %p1114_p5 = por %p1113_p9, %p1112_p8 }
  0xf0   : > { %p1110_p6 = pneg %p1109_p11 }
  0xf1   : > { %p1116_p12 = por %p1115_p7, %p1114_p5 }
  0xf3   : > { %p1117_p1 = pnand %p1116_p12, %p1110_p6 }
  0xf5   : > { %1120 = shalt.err (!%p1117_p1)
}
  0xf6   : > { %s1182_s7 = smov 128   ;;  %s1183_s6 = smov 256  }
  0xf7   : > { %s1184_s26 = smov 8  }
  0xf8   : > { %916 = dma.vmem_to_hbm [thread:$0]  (%p1326_p3), %s1724_s14, 1792, %s1722_s17, %s651_s13, %s1182_s7, %s1183_s6, %s1184_s26  }
  0xf9 PF: > { %s678_s11 = sand.u32 1, %s1159_s18   ;;  %p1801_p2 = scmp.ne.s32.totalorder %s1783_s25, 0 }
  0xfa   : > { %p1802_p13 = scmp.ge.s32.totalorder %s1171_s21, 2  ;;  %s679_s10 = scalar_lea.sflag [#allocation4], %s678_s11 }
  0xfc   : > { %p936_p10 = pnand %p1802_p13, %p1801_p2 }
  0xfe   : > { %1154 = dma.done.wait (!%p936_p10), %s679_s10, 1792  }
  0xff   : > { %1156 = vsyncadd (!%p936_p10), %s679_s10, 4294965504  ;;  %p21_p0 = scmp.ge.s32.totalorder %s1313_s9, 4   ;;  %s1803_s18 = smov %s1163_s19 }
 0x100   : > { %s1804_s19 = smov %s1167_s20  ;;  %s1805_s20 = smov %s1322_s8 }
 0x101   : > { %s1806_s21 = smov %s1313_s9  ;;  %23 = sbr.rel (!%p21_p0) target bundleno = 12 (0xc), region = 116 }
 0x108   :  { %684 = vsyncpa [#allocation3], 1 }
 0x109   :  { %686 = vsyncpa [#allocation3 + $0x1], 1 }
 0x10a   :  { %687 = vsyncpa [#allocation4], 1 }
 0x10b   :  { %689 = vsyncpa [#allocation4 + $0x1], 1 }
 0x10c   :  { %690 = vsyncpa [#allocation5], 1 }
 0x10d   :  { %692 = vsyncpa [#allocation5 + $0x1], 1 }
 0x10e   :  { %693 = vsyncpa [#allocation8], 1 }
 0x10f   :  { %694 = vsyncpa [#allocation11], 1 }

</bundles_post_ra>
